<compile_context>
chip_gen: v6e
topology: v6e:2x2x1
jax: 0.10.0
libtpu: 0.0.40
codegen_flags: <defaults>
</compile_context>

<pallas_src>
import functools

import jax
import jax.numpy as jnp
from jax import lax
from jax.experimental import pallas as pl
from jax.experimental.pallas import tpu as pltpu

EPS = 1e-5


# ----------------------------------------------------------------------------
# Kernel: whole AttentionBlock forward on channels-last, lane-padded features,
# producing both the self-residual and cross-residual outputs.
# ----------------------------------------------------------------------------
def attention_block_kernel(feat_ref, opp_ref,
                           w_all_ref, b_all_ref,
                           w_om_ref, b_om_ref,
                           w_f1q_ref, w_f1m_ref, b_f1_ref,
                           w_f2_ref, b_f2_ref,
                           out_self_ref, out_cross_ref,
                           *, B, N, D, DP):
    """feat/opp/outs: (B*N, DP) f32, row order b*N + n.

    w_all : (DP, 4*DP) bf16 = [W_q | W_q∘W_iq | W_k∘W_ik | W_v∘W_iv]
    w_om  : (DP, DP)   bf16 = out_proj ∘ multihead_message
    w_f1q : (DP, 2DP)  bf16 = final_message conv1, Q-channel rows
    w_f1m : (DP, 2DP)  bf16 = final_message conv1, mm-channel rows
    w_f2  : (2DP, DP)  bf16 = final_message conv2
    biases: f32 row vectors (lane padded).
    """
    x = feat_ref[...]                                      # (B*N, DP) f32
    xb = x.astype(jnp.bfloat16)

    # One wide MXU pass: [Q | q' | k' | v'] (conv projections fused with the
    # MultiheadAttention in-projection on the host).
    proj = jnp.dot(xb, w_all_ref[...],
                   preferred_element_type=jnp.float32) + b_all_ref[...]
    q2b = proj[:, 0 * DP:1 * DP].astype(jnp.bfloat16)      # Q, bf16 immediately
    qp = proj[:, 1 * DP:2 * DP].reshape(B, N, DP)
    kp = proj[:, 2 * DP:3 * DP].reshape(B, N, DP)
    vp = proj[:, 3 * DP:4 * DP].reshape(B, N, DP)

    # final_message conv1, Q branch: independent of the attention chain,
    # so its MXU pass can overlap the softmax VPU/XLU work.
    h_q = jnp.dot(q2b, w_f1q_ref[...], preferred_element_type=jnp.float32)

    # Single-head attention over the (tiny, static) batch axis, per point.
    # Scale uses the real head dim D, not the padded DP.
    scale = 1.0 / (float(D) ** 0.5)
    s = [[jnp.sum(qp[i] * kp[j], axis=-1, keepdims=True) * scale
          for j in range(B)] for i in range(B)]            # each (N, 1)
    attn_parts = []
    for i in range(B):
        m = s[i][0]
        for j in range(1, B):
            m = jnp.maximum(m, s[i][j])
        e = [jnp.exp(s[i][j] - m) for j in range(B)]
        denom = e[0]
        for j in range(1, B):
            denom = denom + e[j]
        inv = 1.0 / denom                                   # exact softmax denom
        out_i = (e[0] * inv) * vp[0]
        for j in range(1, B):
            out_i = out_i + (e[j] * inv) * vp[j]
        attn_parts.append(out_i.astype(jnp.bfloat16))       # (N, DP) bf16, in vregs
    attn = jnp.concatenate(attn_parts, axis=0)               # (B*N, DP) bf16

    # out_proj composed with multihead_message: one (DP, DP) matmul.
    mm2 = jnp.dot(attn, w_om_ref[...],
                  preferred_element_type=jnp.float32) + b_om_ref[...]

    # final_message conv1 (mm branch) + bias, then InstanceNorm1d (one-pass
    # stats, affine=False) + ReLU.
    h = h_q + jnp.dot(mm2.astype(jnp.bfloat16), w_f1m_ref[...],
                      preferred_element_type=jnp.float32) + b_f1_ref[...]
    h = h.reshape(B, N, 2 * DP)
    mu = jnp.mean(h, axis=1, keepdims=True)
    var = jnp.maximum(jnp.mean(h * h, axis=1, keepdims=True) - mu * mu, 0.0)
    h = jnp.maximum((h - mu) * lax.rsqrt(var + EPS), 0.0)

    # final_message conv2 -> InstanceNorm1d -> ReLU.
    h2 = jnp.dot(h.reshape(B * N, 2 * DP).astype(jnp.bfloat16), w_f2_ref[...],
                 preferred_element_type=jnp.float32) + b_f2_ref[...]
    h2 = h2.reshape(B, N, DP)
    mu2 = jnp.mean(h2, axis=1, keepdims=True)
    var2 = jnp.maximum(jnp.mean(h2 * h2, axis=1, keepdims=True) - mu2 * mu2, 0.0)
    h2 = jnp.maximum((h2 - mu2) * lax.rsqrt(var2 + EPS), 0.0).reshape(B * N, DP)

    # Shared final_message, two residual adds (self / cross).
    out_self_ref[...] = x + h2
    out_cross_ref[...] = opp_ref[...] + h2


# ----------------------------------------------------------------------------
# Host-side parameter packing (fold PyTorch-layout weights into padded,
# pre-composed 'x @ W' matrices, bf16 for the MXU, f32 biases).
# ----------------------------------------------------------------------------
def _pad2(m, r, c):
    return jnp.zeros((r, c), jnp.float32).at[:m.shape[0], :m.shape[1]].set(m)


def _pad1(v, n):
    return jnp.zeros((n,), jnp.float32).at[:v.shape[0]].set(v)


def prepare_params(raw, D, DP):
    E = D
    wq, bq = raw['proj_q_w'], raw['proj_q_b']
    wk, bk = raw['proj_k_w'], raw['proj_k_b']
    wv, bv = raw['proj_v_w'], raw['proj_v_b']
    wiq, wik, wiv = (raw['in_proj_w'][:E], raw['in_proj_w'][E:2 * E],
                     raw['in_proj_w'][2 * E:])
    biq, bik, biv = (raw['in_proj_b'][:E], raw['in_proj_b'][E:2 * E],
                     raw['in_proj_b'][2 * E:])
    wo, bo = raw['out_proj_w'], raw['out_proj_b']
    wmm, bmm = raw['mm_w'], raw['mm_b']
    wf1, bf1 = raw['f1_w'], raw['f1_b']
    wf2, bf2 = raw['f2_w'], raw['f2_b']

    # Compose projection convs with the MHA in-projection (exact linear algebra).
    Wq_t = wq.T
    Cq, cbq = wq.T @ wiq.T, bq @ wiq.T + biq
    Ck, cbk = wk.T @ wik.T, bk @ wik.T + bik
    Cv, cbv = wv.T @ wiv.T, bv @ wiv.T + biv
    w_all = jnp.concatenate([_pad2(Wq_t, DP, DP), _pad2(Cq, DP, DP),
                             _pad2(Ck, DP, DP), _pad2(Cv, DP, DP)], axis=1)
    b_all = jnp.concatenate([_pad1(bq, DP), _pad1(cbq, DP),
                             _pad1(cbk, DP), _pad1(cbv, DP)], axis=0)[None, :]

    # Compose attention out_proj with the multihead_message conv.
    Wom, bom = wo.T @ wmm.T, bo @ wmm.T + bmm

    # final_message conv1, split into the Q-input block and the mm-input block
    # (so the kernel never materialises concat([Q, mm])).
    wf1_t = wf1.T                                           # (2E in, 2E out)
    w_f1q = _pad2(wf1_t[:E], DP, 2 * DP)
    w_f1m = _pad2(wf1_t[E:], DP, 2 * DP)

    return {
        'w_all': w_all.astype(jnp.bfloat16), 'b_all': b_all,
        'w_om': _pad2(Wom, DP, DP).astype(jnp.bfloat16),
        'b_om': _pad1(bom, DP)[None, :],
        'w_f1q': w_f1q.astype(jnp.bfloat16),
        'w_f1m': w_f1m.astype(jnp.bfloat16),
        'b_f1': _pad1(bf1, 2 * DP)[None, :],
        'w_f2': _pad2(wf2.T, 2 * DP, DP).astype(jnp.bfloat16),
        'b_f2': _pad1(bf2, DP)[None, :],
    }


def _pad_feature(f, DP):
    B, N, D = f.shape
    fp = jnp.zeros((B, N, DP), jnp.float32).at[:, :, :D].set(f)
    return fp.reshape(B * N, DP)


# ----------------------------------------------------------------------------
# Wrapper: ONE pallas_call produces both residual variants.
# ----------------------------------------------------------------------------
def attention_block_pair(feature, opposite_feature, packed, *, D, DP):
    """Returns (feature + final_msg, opposite_feature + final_msg), each (B, N, D)."""
    B, N, _ = feature.shape
    rows = B * N
    x = _pad_feature(feature, DP)
    opp = _pad_feature(opposite_feature, DP)

    mxu_flops = (2 * rows * DP * (4 * DP) + 2 * rows * DP * DP
                 + 2 * 2 * rows * DP * (2 * DP) + 2 * rows * (2 * DP) * DP)
    attn_flops = 4 * B * B * N * DP
    weight_bytes = (2 * (DP * 4 * DP + DP * DP + 2 * DP * 2 * DP + 2 * DP * DP)
                    + 4 * (4 * DP + DP + 2 * DP + DP))
    cost = pl.CostEstimate(
        flops=int(mxu_flops + attn_flops),
        transcendentals=int(B * B * N + 2 * B * 3 * DP),
        bytes_accessed=int(4 * rows * DP * 4 + weight_bytes))

    kernel = functools.partial(attention_block_kernel, B=B, N=N, D=D, DP=DP)
    vspec = pl.BlockSpec(memory_space=pltpu.MemorySpace.VMEM)
    out_self, out_cross = pl.pallas_call(
        kernel,
        out_shape=(jax.ShapeDtypeStruct((rows, DP), jnp.float32),
                   jax.ShapeDtypeStruct((rows, DP), jnp.float32)),
        in_specs=[vspec] * 11,
        out_specs=(vspec, vspec),
        compiler_params=pltpu.CompilerParams(vmem_limit_bytes=32 * 1024 * 1024),
        cost_estimate=cost,
    )(x, opp,
      packed['w_all'], packed['b_all'],
      packed['w_om'], packed['b_om'],
      packed['w_f1q'], packed['w_f1m'], packed['b_f1'],
      packed['w_f2'], packed['b_f2'])
    out_self = out_self.reshape(B, N, DP)[:, :, :D]
    out_cross = out_cross.reshape(B, N, DP)[:, :, :D]
    return out_self, out_cross


def attention_block(feature, opposite_feature, packed, *, D, DP):
    """Module-style single-output API (opposite_feature may be None)."""
    opp = feature if opposite_feature is None else opposite_feature
    out_self, out_cross = attention_block_pair(feature, opp, packed, D=D, DP=DP)
    return out_self if opposite_feature is None else out_cross


# ----------------------------------------------------------------------------
# Pure-JAX f32 reference (mirrors the PyTorch forward exactly, unpadded).
# ----------------------------------------------------------------------------
def attention_block_ref(feature, opposite_feature, raw, D):
    E = D

    def conv1x1(x, w, b):                                  # channels-last 1x1 conv
        return x @ w.T + b

    def inorm_relu(x):                                     # InstanceNorm1d + ReLU
        mu = jnp.mean(x, axis=1, keepdims=True)
        var = jnp.mean((x - mu) ** 2, axis=1, keepdims=True)
        return jnp.maximum((x - mu) * lax.rsqrt(var + EPS), 0.0)

    Q = conv1x1(feature, raw['proj_q_w'], raw['proj_q_b'])
    K = conv1x1(feature, raw['proj_k_w'], raw['proj_k_b'])
    V = conv1x1(feature, raw['proj_v_w'], raw['proj_v_b'])

    wiq, wik, wiv = (raw['in_proj_w'][:E], raw['in_proj_w'][E:2 * E],
                     raw['in_proj_w'][2 * E:])
    biq, bik, biv = (raw['in_proj_b'][:E], raw['in_proj_b'][E:2 * E],
                     raw['in_proj_b'][2 * E:])
    qp = Q @ wiq.T + biq
    kp = K @ wik.T + bik
    vp = V @ wiv.T + biv

    # MultiheadAttention with batch_first=False: sequence axis = batch (B),
    # batch axis = points (N), single head of dim E.
    scores = jnp.einsum('ind,jnd->nij', qp, kp) / jnp.sqrt(jnp.float32(E))
    p = jax.nn.softmax(scores, axis=-1)
    attn = jnp.einsum('nij,jnd->ind', p, vp)
    attn = attn @ raw['out_proj_w'].T + raw['out_proj_b']

    mm = conv1x1(attn, raw['mm_w'], raw['mm_b'])
    fm = jnp.concatenate([Q, mm], axis=-1)
    fm = inorm_relu(conv1x1(fm, raw['f1_w'], raw['f1_b']))
    fm = inorm_relu(conv1x1(fm, raw['f2_w'], raw['f2_b']))

    resid = feature if opposite_feature is None else opposite_feature
    return resid + fm


# ----------------------------------------------------------------------------
# Demo
# ----------------------------------------------------------------------------
if __name__ == "__main__":
    B, N, D = 2, 64, 96          # batch, num_pts, in_dims (as in the module)
    DP = 128                     # lane-padded channel dim

    key = jax.random.PRNGKey(0)
    ks = jax.random.split(key, 20)

    def w(i, shape, scale=0.1):
        return (scale * jax.random.normal(ks[i], shape)).astype(jnp.float32)

    # PyTorch-layout parameters (conv weights (out,in), Linear weights (out,in)).
    raw = {
        'proj_q_w': w(0, (D, D)),      'proj_q_b': w(1, (D,)),
        'proj_k_w': w(2, (D, D)),      'proj_k_b': w(3, (D,)),
        'proj_v_w': w(4, (D, D)),      'proj_v_b': w(5, (D,)),
        'in_proj_w': w(6, (3 * D, D)), 'in_proj_b': w(7, (3 * D,)),
        'out_proj_w': w(8, (D, D)),    'out_proj_b': w(9, (D,)),
        'mm_w': w(10, (D, D)),         'mm_b': w(11, (D,)),
        'f1_w': w(12, (2 * D, 2 * D)), 'f1_b': w(13, (2 * D,)),
        'f2_w': w(14, (D, 2 * D)),     'f2_b': w(15, (D,)),
    }
    feature = jax.random.normal(ks[16], (B, N, D), jnp.float32)
    opposite = jax.random.normal(ks[17], (B, N, D), jnp.float32)

    packed = prepare_params(raw, D, DP)

    # One fused pallas_call yields both the self-residual and cross-residual outputs.
    out_self, out_cross = attention_block_pair(feature, opposite, packed, D=D, DP=DP)
    out_self, out_cross = jax.block_until_ready((out_self, out_cross))

    ref_self = attention_block_ref(feature, None, raw, D)
    ref_cross = attention_block_ref(feature, opposite, raw, D)

    for o, r in ((out_self, ref_self), (out_cross, ref_cross)):
        assert o.shape == (B, N, D)
        assert bool(jnp.all(jnp.isfinite(o)))
        err = float(jnp.max(jnp.abs(o - r)))
        scale = float(jnp.max(jnp.abs(r))) + 1e-6
        # bf16 MXU operands (f32 accumulation, exact softmax recip) => tolerance.
        assert err <= 0.05 * scale + 0.05, f"mismatch: max|diff|={err}, ref scale={scale}"

    print("KERNEL_OK")
</pallas_src>

<mosaic_0001>
module attributes {stable_mosaic.version = 11 : i64} {
  func.func @attention_block_kernel(%arg0: memref<128x128xf32, #tpu.memory_space<vmem>>, %arg1: memref<128x128xf32, #tpu.memory_space<vmem>>, %arg2: memref<128x512xbf16, #tpu.memory_space<vmem>>, %arg3: memref<1x512xf32, #tpu.memory_space<vmem>>, %arg4: memref<128x128xbf16, #tpu.memory_space<vmem>>, %arg5: memref<1x128xf32, #tpu.memory_space<vmem>>, %arg6: memref<128x256xbf16, #tpu.memory_space<vmem>>, %arg7: memref<128x256xbf16, #tpu.memory_space<vmem>>, %arg8: memref<1x256xf32, #tpu.memory_space<vmem>>, %arg9: memref<256x128xbf16, #tpu.memory_space<vmem>>, %arg10: memref<1x128xf32, #tpu.memory_space<vmem>>, %arg11: memref<128x128xf32, #tpu.memory_space<vmem>>, %arg12: memref<128x128xf32, #tpu.memory_space<vmem>>) attributes {dimension_semantics = [], scalar_prefetch = 0 : i64, scratch_operands = 0 : i64, tpu.core_type = #tpu.core_type<tc>} {
    %c0 = arith.constant 0 : index
    %c0_0 = arith.constant 0 : index
    %0 = vector.load %arg0[%c0, %c0_0] : memref<128x128xf32, #tpu.memory_space<vmem>>, vector<128x128xf32>
    %1 = arith.truncf %0 : vector<128x128xf32> to vector<128x128xbf16>
    %c0_1 = arith.constant 0 : index
    %c0_2 = arith.constant 0 : index
    %2 = vector.load %arg2[%c0_1, %c0_2] : memref<128x512xbf16, #tpu.memory_space<vmem>>, vector<128x512xbf16>
    %cst = arith.constant dense<0.000000e+00> : vector<128x512xf32>
    %3 = tpu.matmul %1, %2, %cst {dimension_numbers = #tpu.dot_dimension_numbers<[1], [0], [0], [1], [0, 0, 1, 1], [], []>} : vector<128x128xbf16>, vector<128x512xbf16>, vector<128x512xf32> -> vector<128x512xf32>
    %c0_3 = arith.constant 0 : index
    %c0_4 = arith.constant 0 : index
    %4 = vector.load %arg3[%c0_3, %c0_4] : memref<1x512xf32, #tpu.memory_space<vmem>>, vector<1x512xf32>
    %5 = vector.broadcast %4 : vector<1x512xf32> to vector<128x512xf32>
    %6 = arith.addf %3, %5 : vector<128x512xf32>
    %7 = vector.extract_strided_slice %6 {offsets = [0, 0], sizes = [128, 128], strides = [1, 1]} : vector<128x512xf32> to vector<128x128xf32>
    %8 = arith.truncf %7 : vector<128x128xf32> to vector<128x128xbf16>
    %9 = vector.extract_strided_slice %6 {offsets = [0, 128], sizes = [128, 128], strides = [1, 1]} : vector<128x512xf32> to vector<128x128xf32>
    %10 = vector.shape_cast %9 : vector<128x128xf32> to vector<2x64x128xf32>
    %11 = vector.extract_strided_slice %6 {offsets = [0, 256], sizes = [128, 128], strides = [1, 1]} : vector<128x512xf32> to vector<128x128xf32>
    %12 = vector.shape_cast %11 : vector<128x128xf32> to vector<2x64x128xf32>
    %13 = vector.extract_strided_slice %6 {offsets = [0, 384], sizes = [128, 128], strides = [1, 1]} : vector<128x512xf32> to vector<128x128xf32>
    %14 = vector.shape_cast %13 : vector<128x128xf32> to vector<2x64x128xf32>
    %c0_5 = arith.constant 0 : index
    %c0_6 = arith.constant 0 : index
    %15 = vector.load %arg6[%c0_5, %c0_6] : memref<128x256xbf16, #tpu.memory_space<vmem>>, vector<128x256xbf16>
    %cst_7 = arith.constant dense<0.000000e+00> : vector<128x256xf32>
    %16 = tpu.matmul %8, %15, %cst_7 {dimension_numbers = #tpu.dot_dimension_numbers<[1], [0], [0], [1], [0, 0, 1, 1], [], []>} : vector<128x128xbf16>, vector<128x256xbf16>, vector<128x256xf32> -> vector<128x256xf32>
    %17 = vector.extract_strided_slice %10 {offsets = [0, 0, 0], sizes = [1, 64, 128], strides = [1, 1, 1]} : vector<2x64x128xf32> to vector<1x64x128xf32>
    %18 = vector.shape_cast %17 : vector<1x64x128xf32> to vector<64x128xf32>
    %19 = vector.extract_strided_slice %12 {offsets = [0, 0, 0], sizes = [1, 64, 128], strides = [1, 1, 1]} : vector<2x64x128xf32> to vector<1x64x128xf32>
    %20 = vector.shape_cast %19 : vector<1x64x128xf32> to vector<64x128xf32>
    %21 = arith.mulf %18, %20 : vector<64x128xf32>
    %cst_8 = arith.constant dense<0.000000e+00> : vector<64xf32>
    %22 = vector.multi_reduction <add>, %21, %cst_8 [1] : vector<64x128xf32> to vector<64xf32>
    %23 = vector.shape_cast %22 : vector<64xf32> to vector<64x1xf32>
    %cst_9 = arith.constant 0.102062076 : f32
    %24 = vector.broadcast %cst_9 : f32 to vector<64x1xf32>
    %25 = arith.mulf %23, %24 : vector<64x1xf32>
    %26 = vector.extract_strided_slice %10 {offsets = [0, 0, 0], sizes = [1, 64, 128], strides = [1, 1, 1]} : vector<2x64x128xf32> to vector<1x64x128xf32>
    %27 = vector.shape_cast %26 : vector<1x64x128xf32> to vector<64x128xf32>
    %28 = vector.extract_strided_slice %12 {offsets = [1, 0, 0], sizes = [1, 64, 128], strides = [1, 1, 1]} : vector<2x64x128xf32> to vector<1x64x128xf32>
    %29 = vector.shape_cast %28 : vector<1x64x128xf32> to vector<64x128xf32>
    %30 = arith.mulf %27, %29 : vector<64x128xf32>
    %cst_10 = arith.constant dense<0.000000e+00> : vector<64xf32>
    %31 = vector.multi_reduction <add>, %30, %cst_10 [1] : vector<64x128xf32> to vector<64xf32>
    %32 = vector.shape_cast %31 : vector<64xf32> to vector<64x1xf32>
    %cst_11 = arith.constant 0.102062076 : f32
    %33 = vector.broadcast %cst_11 : f32 to vector<64x1xf32>
    %34 = arith.mulf %32, %33 : vector<64x1xf32>
    %35 = vector.extract_strided_slice %10 {offsets = [1, 0, 0], sizes = [1, 64, 128], strides = [1, 1, 1]} : vector<2x64x128xf32> to vector<1x64x128xf32>
    %36 = vector.shape_cast %35 : vector<1x64x128xf32> to vector<64x128xf32>
    %37 = vector.extract_strided_slice %12 {offsets = [0, 0, 0], sizes = [1, 64, 128], strides = [1, 1, 1]} : vector<2x64x128xf32> to vector<1x64x128xf32>
    %38 = vector.shape_cast %37 : vector<1x64x128xf32> to vector<64x128xf32>
    %39 = arith.mulf %36, %38 : vector<64x128xf32>
    %cst_12 = arith.constant dense<0.000000e+00> : vector<64xf32>
    %40 = vector.multi_reduction <add>, %39, %cst_12 [1] : vector<64x128xf32> to vector<64xf32>
    %41 = vector.shape_cast %40 : vector<64xf32> to vector<64x1xf32>
    %cst_13 = arith.constant 0.102062076 : f32
    %42 = vector.broadcast %cst_13 : f32 to vector<64x1xf32>
    %43 = arith.mulf %41, %42 : vector<64x1xf32>
    %44 = vector.extract_strided_slice %10 {offsets = [1, 0, 0], sizes = [1, 64, 128], strides = [1, 1, 1]} : vector<2x64x128xf32> to vector<1x64x128xf32>
    %45 = vector.shape_cast %44 : vector<1x64x128xf32> to vector<64x128xf32>
    %46 = vector.extract_strided_slice %12 {offsets = [1, 0, 0], sizes = [1, 64, 128], strides = [1, 1, 1]} : vector<2x64x128xf32> to vector<1x64x128xf32>
    %47 = vector.shape_cast %46 : vector<1x64x128xf32> to vector<64x128xf32>
    %48 = arith.mulf %45, %47 : vector<64x128xf32>
    %cst_14 = arith.constant dense<0.000000e+00> : vector<64xf32>
    %49 = vector.multi_reduction <add>, %48, %cst_14 [1] : vector<64x128xf32> to vector<64xf32>
    %50 = vector.shape_cast %49 : vector<64xf32> to vector<64x1xf32>
    %cst_15 = arith.constant 0.102062076 : f32
    %51 = vector.broadcast %cst_15 : f32 to vector<64x1xf32>
    %52 = arith.mulf %50, %51 : vector<64x1xf32>
    %53 = arith.maximumf %25, %34 : vector<64x1xf32>
    %54 = arith.subf %25, %53 : vector<64x1xf32>
    %55 = math.exp %54 : vector<64x1xf32>
    %56 = arith.subf %34, %53 : vector<64x1xf32>
    %57 = math.exp %56 : vector<64x1xf32>
    %58 = arith.addf %55, %57 : vector<64x1xf32>
    %cst_16 = arith.constant 1.000000e+00 : f32
    %59 = vector.broadcast %cst_16 : f32 to vector<64x1xf32>
    %60 = arith.divf %59, %58 : vector<64x1xf32>
    %61 = arith.mulf %55, %60 : vector<64x1xf32>
    %62 = vector.extract_strided_slice %14 {offsets = [0, 0, 0], sizes = [1, 64, 128], strides = [1, 1, 1]} : vector<2x64x128xf32> to vector<1x64x128xf32>
    %63 = vector.shape_cast %62 : vector<1x64x128xf32> to vector<64x128xf32>
    %64 = vector.broadcast %61 : vector<64x1xf32> to vector<64x128xf32>
    %65 = arith.mulf %64, %63 : vector<64x128xf32>
    %66 = arith.mulf %57, %60 : vector<64x1xf32>
    %67 = vector.extract_strided_slice %14 {offsets = [1, 0, 0], sizes = [1, 64, 128], strides = [1, 1, 1]} : vector<2x64x128xf32> to vector<1x64x128xf32>
    %68 = vector.shape_cast %67 : vector<1x64x128xf32> to vector<64x128xf32>
    %69 = vector.broadcast %66 : vector<64x1xf32> to vector<64x128xf32>
    %70 = arith.mulf %69, %68 : vector<64x128xf32>
    %71 = arith.addf %65, %70 : vector<64x128xf32>
    %72 = arith.truncf %71 : vector<64x128xf32> to vector<64x128xbf16>
    %73 = arith.maximumf %43, %52 : vector<64x1xf32>
    %74 = arith.subf %43, %73 : vector<64x1xf32>
    %75 = math.exp %74 : vector<64x1xf32>
    %76 = arith.subf %52, %73 : vector<64x1xf32>
    %77 = math.exp %76 : vector<64x1xf32>
    %78 = arith.addf %75, %77 : vector<64x1xf32>
    %cst_17 = arith.constant 1.000000e+00 : f32
    %79 = vector.broadcast %cst_17 : f32 to vector<64x1xf32>
    %80 = arith.divf %79, %78 : vector<64x1xf32>
    %81 = arith.mulf %75, %80 : vector<64x1xf32>
    %82 = vector.extract_strided_slice %14 {offsets = [0, 0, 0], sizes = [1, 64, 128], strides = [1, 1, 1]} : vector<2x64x128xf32> to vector<1x64x128xf32>
    %83 = vector.shape_cast %82 : vector<1x64x128xf32> to vector<64x128xf32>
    %84 = vector.broadcast %81 : vector<64x1xf32> to vector<64x128xf32>
    %85 = arith.mulf %84, %83 : vector<64x128xf32>
    %86 = arith.mulf %77, %80 : vector<64x1xf32>
    %87 = vector.extract_strided_slice %14 {offsets = [1, 0, 0], sizes = [1, 64, 128], strides = [1, 1, 1]} : vector<2x64x128xf32> to vector<1x64x128xf32>
    %88 = vector.shape_cast %87 : vector<1x64x128xf32> to vector<64x128xf32>
    %89 = vector.broadcast %86 : vector<64x1xf32> to vector<64x128xf32>
    %90 = arith.mulf %89, %88 : vector<64x128xf32>
    %91 = arith.addf %85, %90 : vector<64x128xf32>
    %92 = arith.truncf %91 : vector<64x128xf32> to vector<64x128xbf16>
    %93 = tpu.concatenate %72, %92 in 0 : vector<64x128xbf16>, vector<64x128xbf16> -> vector<128x128xbf16>
    %c0_18 = arith.constant 0 : index
    %c0_19 = arith.constant 0 : index
    %94 = vector.load %arg4[%c0_18, %c0_19] : memref<128x128xbf16, #tpu.memory_space<vmem>>, vector<128x128xbf16>
    %cst_20 = arith.constant dense<0.000000e+00> : vector<128x128xf32>
    %95 = tpu.matmul %93, %94, %cst_20 {dimension_numbers = #tpu.dot_dimension_numbers<[1], [0], [0], [1], [0, 0, 1, 1], [], []>} : vector<128x128xbf16>, vector<128x128xbf16>, vector<128x128xf32> -> vector<128x128xf32>
    %c0_21 = arith.constant 0 : index
    %c0_22 = arith.constant 0 : index
    %96 = vector.load %arg5[%c0_21, %c0_22] : memref<1x128xf32, #tpu.memory_space<vmem>>, vector<1x128xf32>
    %97 = vector.broadcast %96 : vector<1x128xf32> to vector<128x128xf32>
    %98 = arith.addf %95, %97 : vector<128x128xf32>
    %99 = arith.truncf %98 : vector<128x128xf32> to vector<128x128xbf16>
    %c0_23 = arith.constant 0 : index
    %c0_24 = arith.constant 0 : index
    %100 = vector.load %arg7[%c0_23, %c0_24] : memref<128x256xbf16, #tpu.memory_space<vmem>>, vector<128x256xbf16>
    %cst_25 = arith.constant dense<0.000000e+00> : vector<128x256xf32>
    %101 = tpu.matmul %99, %100, %cst_25 {dimension_numbers = #tpu.dot_dimension_numbers<[1], [0], [0], [1], [0, 0, 1, 1], [], []>} : vector<128x128xbf16>, vector<128x256xbf16>, vector<128x256xf32> -> vector<128x256xf32>
    %102 = arith.addf %16, %101 : vector<128x256xf32>
    %c0_26 = arith.constant 0 : index
    %c0_27 = arith.constant 0 : index
    %103 = vector.load %arg8[%c0_26, %c0_27] : memref<1x256xf32, #tpu.memory_space<vmem>>, vector<1x256xf32>
    %104 = vector.broadcast %103 : vector<1x256xf32> to vector<128x256xf32>
    %105 = arith.addf %102, %104 : vector<128x256xf32>
    %106 = vector.shape_cast %105 : vector<128x256xf32> to vector<2x64x256xf32>
    %cst_28 = arith.constant dense<0.000000e+00> : vector<2x256xf32>
    %107 = vector.multi_reduction <add>, %106, %cst_28 [1] : vector<2x64x256xf32> to vector<2x256xf32>
    %108 = vector.shape_cast %107 : vector<2x256xf32> to vector<2x1x256xf32>
    %cst_29 = arith.constant 6.400000e+01 : f32
    %109 = vector.broadcast %cst_29 : f32 to vector<2x1x256xf32>
    %110 = arith.divf %108, %109 : vector<2x1x256xf32>
    %111 = arith.mulf %106, %106 : vector<2x64x256xf32>
    %cst_30 = arith.constant dense<0.000000e+00> : vector<2x256xf32>
    %112 = vector.multi_reduction <add>, %111, %cst_30 [1] : vector<2x64x256xf32> to vector<2x256xf32>
    %113 = vector.shape_cast %112 : vector<2x256xf32> to vector<2x1x256xf32>
    %cst_31 = arith.constant 6.400000e+01 : f32
    %114 = vector.broadcast %cst_31 : f32 to vector<2x1x256xf32>
    %115 = arith.divf %113, %114 : vector<2x1x256xf32>
    %116 = arith.mulf %110, %110 : vector<2x1x256xf32>
    %117 = arith.subf %115, %116 : vector<2x1x256xf32>
    %cst_32 = arith.constant 0.000000e+00 : f32
    %118 = vector.broadcast %cst_32 : f32 to vector<2x1x256xf32>
    %119 = arith.maximumf %117, %118 : vector<2x1x256xf32>
    %120 = vector.broadcast %110 : vector<2x1x256xf32> to vector<2x64x256xf32>
    %121 = arith.subf %106, %120 : vector<2x64x256xf32>
    %cst_33 = arith.constant 9.99999974E-6 : f32
    %122 = vector.broadcast %cst_33 : f32 to vector<2x1x256xf32>
    %123 = arith.addf %119, %122 : vector<2x1x256xf32>
    %124 = math.rsqrt %123 : vector<2x1x256xf32>
    %125 = vector.broadcast %124 : vector<2x1x256xf32> to vector<2x64x256xf32>
    %126 = arith.mulf %121, %125 : vector<2x64x256xf32>
    %cst_34 = arith.constant 0.000000e+00 : f32
    %127 = vector.broadcast %cst_34 : f32 to vector<2x64x256xf32>
    %128 = arith.maximumf %126, %127 : vector<2x64x256xf32>
    %129 = vector.shape_cast %128 : vector<2x64x256xf32> to vector<128x256xf32>
    %130 = arith.truncf %129 : vector<128x256xf32> to vector<128x256xbf16>
    %c0_35 = arith.constant 0 : index
    %c0_36 = arith.constant 0 : index
    %131 = vector.load %arg9[%c0_35, %c0_36] : memref<256x128xbf16, #tpu.memory_space<vmem>>, vector<256x128xbf16>
    %cst_37 = arith.constant dense<0.000000e+00> : vector<128x128xf32>
    %132 = tpu.matmul %130, %131, %cst_37 {dimension_numbers = #tpu.dot_dimension_numbers<[1], [0], [0], [1], [0, 0, 1, 1], [], []>} : vector<128x256xbf16>, vector<256x128xbf16>, vector<128x128xf32> -> vector<128x128xf32>
    %c0_38 = arith.constant 0 : index
    %c0_39 = arith.constant 0 : index
    %133 = vector.load %arg10[%c0_38, %c0_39] : memref<1x128xf32, #tpu.memory_space<vmem>>, vector<1x128xf32>
    %134 = vector.broadcast %133 : vector<1x128xf32> to vector<128x128xf32>
    %135 = arith.addf %132, %134 : vector<128x128xf32>
    %136 = vector.shape_cast %135 : vector<128x128xf32> to vector<2x64x128xf32>
    %cst_40 = arith.constant dense<0.000000e+00> : vector<2x128xf32>
    %137 = vector.multi_reduction <add>, %136, %cst_40 [1] : vector<2x64x128xf32> to vector<2x128xf32>
    %138 = vector.shape_cast %137 : vector<2x128xf32> to vector<2x1x128xf32>
    %cst_41 = arith.constant 6.400000e+01 : f32
    %139 = vector.broadcast %cst_41 : f32 to vector<2x1x128xf32>
    %140 = arith.divf %138, %139 : vector<2x1x128xf32>
    %141 = arith.mulf %136, %136 : vector<2x64x128xf32>
    %cst_42 = arith.constant dense<0.000000e+00> : vector<2x128xf32>
    %142 = vector.multi_reduction <add>, %141, %cst_42 [1] : vector<2x64x128xf32> to vector<2x128xf32>
    %143 = vector.shape_cast %142 : vector<2x128xf32> to vector<2x1x128xf32>
    %cst_43 = arith.constant 6.400000e+01 : f32
    %144 = vector.broadcast %cst_43 : f32 to vector<2x1x128xf32>
    %145 = arith.divf %143, %144 : vector<2x1x128xf32>
    %146 = arith.mulf %140, %140 : vector<2x1x128xf32>
    %147 = arith.subf %145, %146 : vector<2x1x128xf32>
    %cst_44 = arith.constant 0.000000e+00 : f32
    %148 = vector.broadcast %cst_44 : f32 to vector<2x1x128xf32>
    %149 = arith.maximumf %147, %148 : vector<2x1x128xf32>
    %150 = vector.broadcast %140 : vector<2x1x128xf32> to vector<2x64x128xf32>
    %151 = arith.subf %136, %150 : vector<2x64x128xf32>
    %cst_45 = arith.constant 9.99999974E-6 : f32
    %152 = vector.broadcast %cst_45 : f32 to vector<2x1x128xf32>
    %153 = arith.addf %149, %152 : vector<2x1x128xf32>
    %154 = math.rsqrt %153 : vector<2x1x128xf32>
    %155 = vector.broadcast %154 : vector<2x1x128xf32> to vector<2x64x128xf32>
    %156 = arith.mulf %151, %155 : vector<2x64x128xf32>
    %cst_46 = arith.constant 0.000000e+00 : f32
    %157 = vector.broadcast %cst_46 : f32 to vector<2x64x128xf32>
    %158 = arith.maximumf %156, %157 : vector<2x64x128xf32>
    %159 = vector.shape_cast %158 : vector<2x64x128xf32> to vector<128x128xf32>
    %160 = arith.addf %0, %159 : vector<128x128xf32>
    %c0_47 = arith.constant 0 : index
    %c0_48 = arith.constant 0 : index
    %161 = vector.load %arg11[%c0_47, %c0_48] : memref<128x128xf32, #tpu.memory_space<vmem>>, vector<128x128xf32>
    tpu.vector_store %arg11[%c0_47, %c0_48], %160 {strides = array<i32>} : memref<128x128xf32, #tpu.memory_space<vmem>>, vector<128x128xf32>,
    %c0_49 = arith.constant 0 : index
    %c0_50 = arith.constant 0 : index
    %162 = vector.load %arg1[%c0_49, %c0_50] : memref<128x128xf32, #tpu.memory_space<vmem>>, vector<128x128xf32>
    %163 = arith.addf %162, %159 : vector<128x128xf32>
    %c0_51 = arith.constant 0 : index
    %c0_52 = arith.constant 0 : index
    %164 = vector.load %arg12[%c0_51, %c0_52] : memref<128x128xf32, #tpu.memory_space<vmem>>, vector<128x128xf32>
    tpu.vector_store %arg12[%c0_51, %c0_52], %163 {strides = array<i32>} : memref<128x128xf32, #tpu.memory_space<vmem>>, vector<128x128xf32>,
    return
  }
}

</mosaic_0001>

<bundles_post_ra>
// kernel: tpu_custom_call.1
= control target key start
LH: loop header
LB: loop body
LE: loop exit
PB: predicated region body
PF: predicated region fallthrough
CT: control target
= control target key end

     0   :  { %18 = vsyncpa [#allocation3], 0  ;;  %s4159_s0 = inlined_call_operand.hbm [shape: f32[128,128], index: 0, kind: input, shape index: {}]   ;;  %s4160_s1 = inlined_call_operand.hbm [shape: f32[128,128], index: 1, kind: input, shape index: {}]   ;;  %s4161_s2 = inlined_call_operand.hbm [shape: bf16[128,512], index: 2, kind: input, shape index: {}]   ;;  %s4162_s3 = inlined_call_operand.vmem [shape: f32[1,512], index: 3, kind: input, shape index: {}]   ;;  %s4163_s4 = inlined_call_operand.hbm [shape: bf16[128,128], index: 4, kind: input, shape index: {}]   ;;  %s4164_s5 = inlined_call_operand.vmem [shape: f32[1,128], index: 5, kind: input, shape index: {}]   ;;  %s4165_s6 = inlined_call_operand.hbm [shape: bf16[128,256], index: 6, kind: input, shape index: {}]   ;;  %s4166_s7 = inlined_call_operand.hbm [shape: bf16[128,256], index: 7, kind: input, shape index: {}]   ;;  %s4167_s8 = inlined_call_operand.vmem [shape: f32[1,256], index: 8, kind: input, shape index: {}]   ;;  %s4168_s9 = inlined_call_operand.hbm [shape: bf16[256,128], index: 9, kind: input, shape index: {}]   ;;  %s4169_s10 = inlined_call_operand.vmem [shape: f32[1,128], index: 10, kind: input, shape index: {}]   ;;  %s4170_s11 = inlined_call_operand.hbm [shape: f32[128,128], index: 11, kind: output, shape index: {0}]   ;;  %s4171_s12 = inlined_call_operand.hbm [shape: f32[128,128], index: 12, kind: output, shape index: {1}]  }
   0x1   :  { %19 = vsyncpa [#allocation6], 0 }
   0x2   :  { %20 = vsyncpa [#allocation9], 0 }
   0x3   :  { %21 = vsyncpa [#allocation12], 0 }
   0x4   :  { %22 = vsyncpa [#allocation4], 0 }
   0x5   :  { %23 = vsyncpa [#allocation16], 0  ;;  %s3049_s21 = smov [#allocation5]   ;;  %s3050_s23 = smov [#allocation8]  }
   0x6   :  { %s41_s22 = sshll.u32 %s3049_s21, 4  ;;  %s67_s24 = sshll.u32 %s3050_s23, 4  ;;  %s42_s22 = int_to_ptr.vmem [resolvable:$true] %s41_s22  ;;  %s68_s24 = int_to_ptr.vmem [resolvable:$true] %s67_s24 }
   0x7   :  { %s2865_s25 = scalar_lea.vmem %s42_s22, 2048  ;;  %p2870_p1 = scmp.lt.s32.totalorder %s42_s22, %s42_s22 }
   0x8   :  { %p2866_p0 = scmp.ne.s32.totalorder %s42_s22, %s2865_s25  ;;  %p2871_p2 = scmp.lt.s32.totalorder %s2865_s25, %s2865_s25 }
   0xa   :  { %p2872_p3 = por %p2871_p2, %p2870_p1 }
   0xc   :  { %p2873_p4 = pnand %p2872_p3, %p2866_p0 }
   0xe   :  { %2876 = shalt.err (!%p2873_p4)
}
   0xf   :  { %s3051_s26 = smov 128   ;;  %s3052_s27 = smov 8  }
  0x10   :  { %47 = dma.hbm_to_vmem [thread:$0]  %s4160_s1, 2048, %s42_s22, [#allocation6], %s3051_s26, %s3051_s26, %s3052_s27  }
  0x11   :  { %s2885_s30 = scalar_lea.vmem %s68_s24, 1024  ;;  %p2890_p6 = scmp.lt.s32.totalorder %s68_s24, %s68_s24 }
  0x12   :  { %p2886_p5 = scmp.ne.s32.totalorder %s68_s24, %s2885_s30  ;;  %p2891_p7 = scmp.lt.s32.totalorder %s2885_s30, %s2885_s30 }
  0x14   :  { %p2892_p8 = por %p2891_p7, %p2890_p6 }
  0x16   :  { %p2893_p9 = pnand %p2892_p8, %p2886_p5 }
  0x18   :  { %2896 = shalt.err (!%p2893_p9)
}
  0x19   :  { %s3053_s13 = smov 64   ;;  %s3054_s14 = smov 4  }
  0x1a   :  { %73 = dma.hbm_to_vmem [thread:$0]  %s4163_s4, 1024, %s68_s24, [#allocation9], %s3053_s13, %s3053_s13, %s3054_s14  }
  0x1b   :  { %s3055_s17 = smov [#allocation11]   ;;  %s3056_s19 = smov [#allocation2]  }
  0x1c   :  { %s93_s18 = sshll.u32 %s3055_s17, 4  ;;  %s29_s1 = sshll.u32 %s3056_s19, 4  ;;  %s94_s18 = int_to_ptr.vmem [resolvable:$true] %s93_s18  ;;  %s30_s1 = int_to_ptr.vmem [resolvable:$true] %s29_s1 }
  0x1d   :  { %s2905_s20 = scalar_lea.vmem %s94_s18, 2048  ;;  %p2910_p11 = scmp.lt.s32.totalorder %s94_s18, %s94_s18 }
  0x1e   :  { %p2906_p10 = scmp.ne.s32.totalorder %s94_s18, %s2905_s20  ;;  %p2911_p12 = scmp.lt.s32.totalorder %s2905_s20, %s2905_s20 }
  0x20   :  { %p2912_p13 = por %p2911_p12, %p2910_p11 }
  0x22   :  { %p2913_p0 = pnand %p2912_p13, %p2906_p10 }
  0x24   :  { %2916 = shalt.err (!%p2913_p0)
}
  0x25   :  { %99 = dma.hbm_to_vmem [thread:$0]  %s4166_s7, 2048, %s94_s18, [#allocation12], %s3051_s26, %s3051_s26, %s3052_s27  }
  0x26   :  { %s2925_s4 = scalar_lea.vmem %s30_s1, 2048  ;;  %p2930_p2 = scmp.lt.s32.totalorder %s30_s1, %s30_s1 }
  0x27   :  { %p2926_p1 = scmp.ne.s32.totalorder %s30_s1, %s2925_s4  ;;  %p2931_p3 = scmp.lt.s32.totalorder %s2925_s4, %s2925_s4 }
  0x29   :  { %p2932_p4 = por %p2931_p3, %p2930_p2 }
  0x2b   :  { %p2933_p5 = pnand %p2932_p4, %p2926_p1 }
  0x2d   :  { %2936 = shalt.err (!%p2933_p5)
}
  0x2e   :  { %35 = dma.hbm_to_vmem [thread:$0]  %s4159_s0, 2048, %s30_s1, [#allocation3], %s3051_s26, %s3051_s26, %s3052_s27  }
  0x2f   :  { %s3057_s25 = smov [#allocation7]  }
  0x30   :  { %s53_s28 = sshll.u32 %s3057_s25, 4  ;;  %s54_s28 = int_to_ptr.vmem [resolvable:$true] %s53_s28 }
  0x31   :  { %s2945_s29 = scalar_lea.vmem %s54_s28, 4096  ;;  %p2950_p7 = scmp.lt.s32.totalorder %s54_s28, %s54_s28 }
  0x32   :  { %p2946_p6 = scmp.ne.s32.totalorder %s54_s28, %s2945_s29  ;;  %p2951_p8 = scmp.lt.s32.totalorder %s2945_s29, %s2945_s29 }
  0x34   :  { %p2952_p9 = por %p2951_p8, %p2950_p7 }
  0x36   :  { %p2953_p10 = pnand %p2952_p9, %p2946_p6 }
  0x38   :  { %2956 = shalt.err (!%p2953_p10)
}
  0x39   :  { %s3058_s7 = smov 256   ;;  %s3059_s30 = smov 16  }
  0x3a   :  { %59 = dma.hbm_to_vmem [thread:$0]  %s4161_s2, 4096, %s54_s28, [#allocation6], %s3058_s7, %s3058_s7, %s3059_s30  }
  0x3b   :  { %s3060_s17 = smov [#allocation10]   ;;  %s3061_s0 = smov [#allocation13]  }
  0x3c   :  { %s81_s18 = sshll.u32 %s3060_s17, 4  ;;  %s107_s19 = sshll.u32 %s3061_s0, 4  ;;  %s82_s18 = int_to_ptr.vmem [resolvable:$true] %s81_s18  ;;  %s108_s19 = int_to_ptr.vmem [resolvable:$true] %s107_s19 }
  0x3d   :  { %s2965_s1 = scalar_lea.vmem %s82_s18, 2048  ;;  %p2970_p12 = scmp.lt.s32.totalorder %s82_s18, %s82_s18 }
  0x3e   :  { %p2966_p11 = scmp.ne.s32.totalorder %s82_s18, %s2965_s1  ;;  %p2971_p13 = scmp.lt.s32.totalorder %s2965_s1, %s2965_s1 }
  0x40   :  { %p2972_p0 = por %p2971_p13, %p2970_p12 }
  0x42   :  { %p2973_p1 = pnand %p2972_p0, %p2966_p11 }
  0x44   :  { %2976 = shalt.err (!%p2973_p1)
}
  0x45   :  { %87 = dma.hbm_to_vmem [thread:$0]  %s4165_s6, 2048, %s82_s18, [#allocation9], %s3051_s26, %s3051_s26, %s3052_s27  }
  0x46   :  { %s2985_s2 = scalar_lea.vmem %s108_s19, 2048  ;;  %p2990_p3 = scmp.lt.s32.totalorder %s108_s19, %s108_s19 }
  0x47   :  { %p2986_p2 = scmp.ne.s32.totalorder %s108_s19, %s2985_s2  ;;  %p2991_p4 = scmp.lt.s32.totalorder %s2985_s2, %s2985_s2 }
  0x49   :  { %p2992_p5 = por %p2991_p4, %p2990_p3 }
  0x4b   :  { %p2993_p6 = pnand %p2992_p5, %p2986_p2 }
  0x4d   :  { %2996 = shalt.err (!%p2993_p6)
}
  0x4e   :  { %113 = dma.hbm_to_vmem [thread:$0]  %s4168_s9, 2048, %s108_s19, [#allocation12], %s3053_s13, %s3053_s13, %s3054_s14  }
  0x4f   :  { %3037 = dma.done.wait [#allocation3], 2048  }
  0x50   :  { %3038 = vsyncadd [#allocation3], 4294965248 }
  0x51   :  { %3039 = dma.done.wait [#allocation6], 6144  }
  0x52   :  { %3040 = vsyncadd [#allocation6], 4294961152 }
  0x53   :  { %3041 = dma.done.wait [#allocation9], 3072  }
  0x54   :  { %3042 = vsyncadd [#allocation9], 4294964224 }
  0x55   :  { %3043 = dma.done.wait [#allocation12], 4096  }
  0x56   :  { %3044 = vsyncadd [#allocation12], 4294963200  ;;  %v4174_v0 = vmov 0   ;;  %v2613_v1 = vld [vmem:[#allocation7 + $0xe4] ss:$16 sps:$4 sm:$0xff]   ;;  %v139_v34 = vld [vmem:[#allocation2 + $0x8] sm:$0xff]  ;;  %v196_v57 = vlaneseq }
  0x57   :  { %408 = vmatprep.mubr.bf16.mxu0 %v4174_v0  ;;  %521 = vmatprep.mubr.bf16.mxu1 %v4174_v0  ;;  %v2615_v2 = vld [vmem:[#allocation7 + $0xec] ss:$16 sps:$4 sm:$0xff]   ;;  %v2617_v3 = vld [vmem:[#allocation7 + $0xe0] ss:$16 sps:$4 sm:$0xff]   ;;  %v2618_v4 = vld [vmem:[#allocation7 + $0xe8] ss:$16 sps:$4 sm:$0xff]  }
  0x58   :  { %376 = vmatprep.subr.bf16.mxu0 %v2613_v1  ;;  %489 = vmatprep.subr.bf16.mxu1 %v2615_v2  ;;  %v2619_v5 = vld [vmem:[#allocation7 + $0xc4] ss:$16 sps:$4 sm:$0xff]   ;;  %v2621_v6 = vld [vmem:[#allocation7 + $0xcc] ss:$16 sps:$4 sm:$0xff]   ;;  %v2623_v7 = vld [vmem:[#allocation7 + $0xc0] ss:$16 sps:$4 sm:$0xff]  }
  0x59   :  { %377 = vmatpush1.bf16.msra.mxu0 %v2617_v3  ;;  %490 = vmatpush1.bf16.msra.mxu1 %v2618_v4  ;;  %v2624_v8 = vld [vmem:[#allocation7 + $0xc8] ss:$16 sps:$4 sm:$0xff]   ;;  %v2625_v9 = vld [vmem:[#allocation7 + $0xa4] ss:$16 sps:$4 sm:$0xff]   ;;  %v2627_v10 = vld [vmem:[#allocation7 + $0xac] ss:$16 sps:$4 sm:$0xff]  }
  0x5a   :  { %378 = vmatprep.subr.bf16.mxu0 %v2619_v5  ;;  %491 = vmatprep.subr.bf16.mxu1 %v2621_v6  ;;  %v2629_v11 = vld [vmem:[#allocation7 + $0xa0] ss:$16 sps:$4 sm:$0xff]   ;;  %v2630_v12 = vld [vmem:[#allocation7 + $0xa8] ss:$16 sps:$4 sm:$0xff]   ;;  %v2631_v13 = vld [vmem:[#allocation7 + $0x84] ss:$16 sps:$4 sm:$0xff]  }
  0x5b   :  { %v2633_v14 = vld [vmem:[#allocation7 + $0x8c] ss:$16 sps:$4 sm:$0xff]   ;;  %v2635_v15 = vld [vmem:[#allocation7 + $0x80] ss:$16 sps:$4 sm:$0xff]   ;;  %v2636_v16 = vld [vmem:[#allocation7 + $0x88] ss:$16 sps:$4 sm:$0xff]  }
  0x5c   :  { %v2637_v17 = vld [vmem:[#allocation7 + $0x64] ss:$16 sps:$4 sm:$0xff]   ;;  %v2639_v18 = vld [vmem:[#allocation7 + $0x6c] ss:$16 sps:$4 sm:$0xff]   ;;  %v2641_v19 = vld [vmem:[#allocation7 + $0x60] ss:$16 sps:$4 sm:$0xff]  }
  0x5d   :  { %379 = vmatpush1.bf16.msra.mxu0 %v2623_v7  ;;  %492 = vmatpush1.bf16.msra.mxu1 %v2624_v8  ;;  %v2642_v20 = vld [vmem:[#allocation7 + $0x68] ss:$16 sps:$4 sm:$0xff]   ;;  %v2643_v21 = vld [vmem:[#allocation7 + $0x44] ss:$16 sps:$4 sm:$0xff]   ;;  %v2645_v22 = vld [vmem:[#allocation7 + $0x4c] ss:$16 sps:$4 sm:$0xff]  }
  0x5e   :  { %380 = vmatprep.subr.bf16.mxu0 %v2625_v9  ;;  %493 = vmatprep.subr.bf16.mxu1 %v2627_v10  ;;  %v2647_v23 = vld [vmem:[#allocation7 + $0x40] ss:$16 sps:$4 sm:$0xff]   ;;  %v2648_v24 = vld [vmem:[#allocation7 + $0x48] ss:$16 sps:$4 sm:$0xff]   ;;  %v2649_v25 = vld [vmem:[#allocation7 + $0x24] ss:$16 sps:$4 sm:$0xff]  }
  0x5f   :  { %v2651_v26 = vld [vmem:[#allocation7 + $0x2c] ss:$16 sps:$4 sm:$0xff]   ;;  %v2653_v27 = vld [vmem:[#allocation7 + $0x20] ss:$16 sps:$4 sm:$0xff]   ;;  %v2654_v28 = vld [vmem:[#allocation7 + $0x28] ss:$16 sps:$4 sm:$0xff]  }
  0x60   :  { %v2655_v29 = vld [vmem:[#allocation7 + $0x4] ss:$16 sps:$4 sm:$0xff]   ;;  %v2657_v30 = vld [vmem:[#allocation7 + $0xc] ss:$16 sps:$4 sm:$0xff]   ;;  %v2659_v31 = vld [vmem:[#allocation7] ss:$16 sps:$4 sm:$0xff]  }
  0x61   :  { %381 = vmatpush1.bf16.msra.mxu0 %v2629_v11  ;;  %494 = vmatpush1.bf16.msra.mxu1 %v2630_v12  ;;  %v2660_v32 = vld [vmem:[#allocation7 + $0x8] ss:$16 sps:$4 sm:$0xff]   ;;  %v138_v33 = vld [vmem:[#allocation2] sm:$0xff]  ;;  %v140_v36 = vld [vmem:[#allocation2 + $0x10] sm:$0xff]  ;;  %v3186_v58 = vshrl.u32 %v196_v57, 7  ;;  %s3064_s25 = smov [#allocation15]  }
  0x62   :  { %382 = vmatprep.subr.bf16.mxu0 %v2631_v13  ;;  %495 = vmatprep.subr.bf16.mxu1 %v2633_v14  ;;  %v154_v35 = vpack.c.bf16 %v139_v34, %v138_v33  ;;  %v141_v37 = vld [vmem:[#allocation2 + $0x18] sm:$0xff]  ;;  %v142_v39 = vld [vmem:[#allocation2 + $0x20] sm:$0xff]  ;;  %v143_v40 = vld [vmem:[#allocation2 + $0x28] sm:$0xff]  ;;  %s2360_s28 = sshll.u32 %s3064_s25, 4  ;;  %s2361_s28 = int_to_ptr.vmem [resolvable:$true] %s2360_s28 }
  0x63   :  { %v155_v38 = vpack.c.bf16 %v141_v37, %v140_v36  ;;  %v156_v41 = vpack.c.bf16 %v143_v40, %v142_v39  ;;  %v144_v42 = vld [vmem:[#allocation2 + $0x30] sm:$0xff]  ;;  %v145_v43 = vld [vmem:[#allocation2 + $0x38] sm:$0xff]  ;;  %v146_v45 = vld [vmem:[#allocation2 + $0x40] sm:$0xff]  ;;  %4185 = vst [vmem:[#allocation23_spill] sm:$0xff] %v3186_v58  ;;  %v4173_v59 = vsub.s32 0, %v3186_v58  ;;  %v206_v60 = vsub.s32 2, %v3186_v58 }
  0x64   :  { %v157_v44 = vpack.c.bf16 %v145_v43, %v144_v42  ;;  %v147_v46 = vld [vmem:[#allocation2 + $0x48] sm:$0xff]  ;;  %v148_v48 = vld [vmem:[#allocation2 + $0x50] sm:$0xff]  ;;  %v149_v49 = vld [vmem:[#allocation2 + $0x58] sm:$0xff]  ;;  %v4172_v61 = vsub.s32 1, %v3186_v58 }
  0x65   :  { %383 = vmatpush1.bf16.msra.mxu0 %v2635_v15  ;;  %496 = vmatpush1.bf16.msra.mxu1 %v2636_v16  ;;  %v158_v47 = vpack.c.bf16 %v147_v46, %v146_v45  ;;  %v159_v50 = vpack.c.bf16 %v149_v49, %v148_v48  ;;  %v150_v51 = vld [vmem:[#allocation2 + $0x60] sm:$0xff]  ;;  %v151_v52 = vld [vmem:[#allocation2 + $0x68] sm:$0xff]  ;;  %v152_v54 = vld [vmem:[#allocation2 + $0x70] sm:$0xff] }
  0x66   :  { %384 = vmatprep.subr.bf16.mxu0 %v2637_v17  ;;  %497 = vmatprep.subr.bf16.mxu1 %v2639_v18  ;;  %v160_v53 = vpack.c.bf16 %v151_v52, %v150_v51  ;;  %v153_v55 = vld [vmem:[#allocation2 + $0x78] sm:$0xff]  ;;  %v3194_v62 = vld [vmem:[%s4162_s3] sm:$0xf] }
  0x67   :  { %v161_v56 = vpack.c.bf16 %v153_v55, %v152_v54  ;;  %v3199_v63 = vrot.slane %v3194_v62, %v4173_v59  ;;  %v3202_v1 = vrot.slane %v3194_v62, %v206_v60  ;;  %v3207_v2 = vrot.slane %v3194_v62, %v4172_v61 }
  0x69   :  { %385 = vmatpush1.bf16.msra.mxu0 %v2641_v19  ;;  %498 = vmatpush1.bf16.msra.mxu1 %v2642_v20 }
  0x6a   :  { %386 = vmatprep.subr.bf16.mxu0 %v2643_v21  ;;  %499 = vmatprep.subr.bf16.mxu1 %v2645_v22 }
  0x6d   :  { %387 = vmatpush1.bf16.msra.mxu0 %v2647_v23  ;;  %500 = vmatpush1.bf16.msra.mxu1 %v2648_v24 }
  0x6e   :  { %388 = vmatprep.subr.bf16.mxu0 %v2649_v25  ;;  %501 = vmatprep.subr.bf16.mxu1 %v2651_v26 }
  0x71   :  { %389 = vmatpush1.bf16.msra.mxu0 %v2653_v27  ;;  %502 = vmatpush1.bf16.msra.mxu1 %v2654_v28 }
  0x72   :  { %390 = vmatprep.subr.bf16.mxu0 %v2655_v29  ;;  %503 = vmatprep.subr.bf16.mxu1 %v2657_v30 }
  0x75   :  { %391 = vmatpush1.bf16.msra.mxu0 %v2659_v31  ;;  %504 = vmatpush1.bf16.msra.mxu1 %v2660_v32 }
  0x78   :  { %409 = vmatmul.mubr.bf16.vlgmr.msra.gmra.mxu0 %v154_v35  ;;  %522 = vmatmul.mubr.bf16.vlgmr.msra.gmra.mxu1 %v154_v35 }
  0x79   :  { %418 = vmatprep.mubr.bf16.mxu0 %v4174_v0  ;;  %531 = vmatprep.mubr.bf16.mxu1 %v4174_v0 }
  0x80   :  { %419 = vmatmul.mubr.bf16.gmra.mxu0 %v155_v38  ;;  %532 = vmatmul.mubr.bf16.gmra.mxu1 %v155_v38 }
  0x81   :  { %428 = vmatprep.mubr.bf16.mxu0 %v4174_v0  ;;  %541 = vmatprep.mubr.bf16.mxu1 %v4174_v0 }
  0x88   :  { %429 = vmatmul.mubr.bf16.gmra.mxu0 %v156_v41  ;;  %542 = vmatmul.mubr.bf16.gmra.mxu1 %v156_v41 }
  0x89   :  { %438 = vmatprep.mubr.bf16.mxu0 %v4174_v0  ;;  %551 = vmatprep.mubr.bf16.mxu1 %v4174_v0 }
  0x90   :  { %439 = vmatmul.mubr.bf16.gmra.mxu0 %v157_v44  ;;  %552 = vmatmul.mubr.bf16.gmra.mxu1 %v157_v44 }
  0x91   :  { %448 = vmatprep.mubr.bf16.mxu0 %v4174_v0  ;;  %561 = vmatprep.mubr.bf16.mxu1 %v4174_v0 }
  0x98   :  { %449 = vmatmul.mubr.bf16.gmra.mxu0 %v158_v47  ;;  %562 = vmatmul.mubr.bf16.gmra.mxu1 %v158_v47 }
  0x99   :  { %458 = vmatprep.mubr.bf16.mxu0 %v4174_v0  ;;  %571 = vmatprep.mubr.bf16.mxu1 %v4174_v0 }
  0xa0   :  { %459 = vmatmul.mubr.bf16.gmra.mxu0 %v159_v50  ;;  %572 = vmatmul.mubr.bf16.gmra.mxu1 %v159_v50 }
  0xa1   :  { %468 = vmatprep.mubr.bf16.mxu0 %v4174_v0  ;;  %581 = vmatprep.mubr.bf16.mxu1 %v4174_v0 }
  0xa8   :  { %469 = vmatmul.mubr.bf16.gmra.mxu0 %v160_v53  ;;  %582 = vmatmul.mubr.bf16.gmra.mxu1 %v160_v53 }
  0xa9   :  { %478 = vmatprep.mubr.bf16.mxu0 %v4174_v0  ;;  %591 = vmatprep.mubr.bf16.mxu1 %v4174_v0 }
  0xb0   :  { %479 = vmatmul.mubr.bf16.gmra.mxu0 %v161_v56  ;;  %592 = vmatmul.mubr.bf16.gmra.mxu1 %v161_v56  ;;  %v2661_v56 = vld [vmem:[#allocation8 + $0x38] sm:$0xff]  }
  0xb1   :  { %1306 = vmatprep.mubr.bf16.mxu1 %v4174_v0  ;;  %2549 = vmatprep.subr.bf16.mxu0 %v2661_v56 }
  0xb2   :  { %2550 = vmatpush3.bf16.msra.mxu0 %v2661_v56 }
 0x138   :  { %v410_v3 = vpop.f32.mrf.mxu0  ;;  %v523_v4 = vpop.f32.mrf.mxu1 }
 0x139   :  { %v3212_v7 = vadd.f32 %v410_v3, %v3199_v63  ;;  %v3215_v8 = vadd.f32 %v523_v4, %v3202_v1 }
 0x13a   :  { %v412_v5 = vpop.f32.mrf.mxu0  ;;  %v3209_v6 = vpop.f32.mrf.mxu1 }
 0x13b   :  { %v3218_v9 = vadd.f32 %v412_v5, %v3207_v2 }
 0x13c   :  { %v414_v10 = vpop.f32.mrf.mxu0  ;;  %v527_v11 = vpop.f32.mrf.mxu1 }
 0x13d   :  { %v3221_v12 = vadd.f32 %v414_v10, %v3199_v63  ;;  %v626_v13 = vmul.f32 %v3215_v8, %v3218_v9  ;;  %v3230_v17 = vadd.f32 %v527_v11, %v3202_v1 }
 0x13e   :  { %v416_v14 = vpop.f32.mrf.mxu0  ;;  %v3225_v15 = vpop.f32.mrf.mxu1 }
 0x13f   :  { %v3233_v18 = vadd.f32 %v416_v14, %v3207_v2  ;;  %634 = vadd.xlane.f32.xlu0 %v626_v13 }
 0x140   :  { %v420_v19 = vpop.f32.mrf.mxu0  ;;  %v533_v20 = vpop.f32.mrf.mxu1 }
 0x141   :  { %v627_v21 = vmul.f32 %v3230_v17, %v3233_v18  ;;  %v3240_v24 = vadd.f32 %v420_v19, %v3199_v63  ;;  %v3243_v25 = vadd.f32 %v533_v20, %v3202_v1 }
 0x142   :  { %v422_v22 = vpop.f32.mrf.mxu0  ;;  %v3237_v23 = vpop.f32.mrf.mxu1 }
 0x143   :  { %v3246_v26 = vadd.f32 %v422_v22, %v3207_v2  ;;  %636 = vadd.xlane.f32.xlu0 %v627_v21 }
 0x144   :  { %v424_v27 = vpop.f32.mrf.mxu0  ;;  %v537_v28 = vpop.f32.mrf.mxu1 }
 0x145   :  { %v3249_v29 = vadd.f32 %v424_v27, %v3199_v63  ;;  %v628_v30 = vmul.f32 %v3243_v25, %v3246_v26  ;;  %v3258_v34 = vadd.f32 %v537_v28, %v3202_v1 }
 0x146   :  { %v426_v31 = vpop.f32.mrf.mxu0  ;;  %v3253_v32 = vpop.f32.mrf.mxu1 }
 0x147   :  { %v3261_v35 = vadd.f32 %v426_v31, %v3207_v2  ;;  %638 = vadd.xlane.f32.xlu0 %v628_v30 }
 0x148   :  { %v430_v36 = vpop.f32.mrf.mxu0  ;;  %v543_v37 = vpop.f32.mrf.mxu1 }
 0x149   :  { %v629_v38 = vmul.f32 %v3258_v34, %v3261_v35  ;;  %v3268_v41 = vadd.f32 %v430_v36, %v3199_v63 }
 0x14a   :  { %v432_v39 = vpop.f32.mrf.mxu0  ;;  %v3265_v40 = vpop.f32.mrf.mxu1 }
 0x14b   :  { %640 = vadd.xlane.f32.xlu1 %v629_v38  ;;  %v433_v56 = vadd.f32 %v432_v39, %v3207_v2 }
 0x14c   :  { %v434_v42 = vpop.f32.mrf.mxu0  ;;  %v547_v43 = vpop.f32.mrf.mxu1 }
 0x14d   :  { %v3271_v44 = vadd.f32 %v434_v42, %v3199_v63  ;;  %v3347_v59 = vadd.f32 %v547_v43, %v3202_v1 }
 0x14e   :  { %v436_v45 = vpop.f32.mrf.mxu0  ;;  %v3273_v46 = vpop.f32.mrf.mxu1 }
 0x14f   :  { %v437_v39 = vadd.f32 %v436_v45, %v3207_v2 }
 0x150   :  { %v440_v48 = vpop.f32.mrf.mxu0  ;;  %v553_v49 = vpop.f32.mrf.mxu1 }
 0x151   :  { %v3280_v52 = vadd.f32 %v440_v48, %v3199_v63  ;;  %v3350_v45 = vadd.f32 %v553_v49, %v3202_v1 }
 0x152   :  { %v442_v50 = vpop.f32.mrf.mxu0  ;;  %v3277_v51 = vpop.f32.mrf.mxu1 }
 0x153   :  { %v443_v61 = vadd.f32 %v442_v50, %v3207_v2 }
 0x154   :  { %v444_v53 = vpop.f32.mrf.mxu0  ;;  %v557_v54 = vpop.f32.mrf.mxu1 }
 0x155   :  { %v3283_v55 = vadd.f32 %v444_v53, %v3199_v63  ;;  %v632_v47 = vmul.f32 %v3350_v45, %v443_v61 }
 0x156   :  { %v446_v57 = vpop.f32.mrf.mxu0  ;;  %v3285_v60 = vpop.f32.mrf.mxu1 }
 0x157   :  { %v447_v3 = vadd.f32 %v446_v57, %v3207_v2 }
 0x158   :  { %v450_v4 = vpop.f32.mrf.mxu0  ;;  %v563_v5 = vpop.f32.mrf.mxu1 }
 0x159   :  { %v3290_v10 = vadd.f32 %v563_v5, %v3202_v1  ;;  %v3297_v14 = vadd.f32 %v450_v4, %v3199_v63 }
 0x15a   :  { %v3292_v11 = vpop.f32.mrf.mxu0  ;;  %v3294_v13 = vpop.f32.mrf.mxu1 }
 0x15b   :  { %4186 = vst [vmem:[#allocation24_spill] sm:$0xff] %v3297_v14  ;;  %v658_v19 = vmul.f32 %v3290_v10, %v3218_v9 }
 0x15c   :  { %v454_v20 = vpop.f32.mrf.mxu0  ;;  %v567_v21 = vpop.f32.mrf.mxu1 }
 0x15d   :  { %v3302_v22 = vadd.f32 %v454_v20, %v3199_v63  ;;  %v3305_v27 = vadd.f32 %v567_v21, %v3202_v1  ;;  %666 = vadd.xlane.f32.xlu1 %v658_v19  ;;  %v3329_v20 = vadd.f32 %v543_v37, %v3202_v1 }
 0x15e   :  { %v3307_v28 = vpop.f32.mrf.mxu0  ;;  %v3309_v30 = vpop.f32.mrf.mxu1 }
 0x15f   :  { %4187 = vst [vmem:[#allocation25_spill] sm:$0xff] %v3302_v22  ;;  %v659_v36 = vmul.f32 %v3305_v27, %v3233_v18 }
 0x160   :  { %v460_v9 = vpop.f32.mrf.mxu0  ;;  %v573_v38 = vpop.f32.mrf.mxu1 }
 0x161   :  { %v3316_v42 = vadd.f32 %v573_v38, %v3202_v1  ;;  %668 = vadd.xlane.f32.xlu1 %v659_v36  ;;  %v3324_v4 = vadd.f32 %v460_v9, %v3199_v63 }
 0x162   :  { %v3318_v48 = vpop.f32.mrf.mxu0  ;;  %v3320_v53 = vpop.f32.mrf.mxu1 }
 0x163   :  { %4188 = vst [vmem:[#allocation26_spill] sm:$0xff] %v3324_v4  ;;  %v660_v5 = vmul.f32 %v3316_v42, %v3246_v26  ;;  %v631_v26 = vmul.f32 %v3347_v59, %v437_v39 }
 0x164   :  { %v464_v19 = vpop.f32.mrf.mxu0  ;;  %v577_v18 = vpop.f32.mrf.mxu1 }
 0x165   :  { %v3332_v21 = vadd.f32 %v464_v19, %v3199_v63  ;;  %v3335_v36 = vadd.f32 %v577_v18, %v3202_v1  ;;  %670 = vadd.xlane.f32.xlu0 %v660_v5  ;;  %v630_v19 = vmul.f32 %v3329_v20, %v433_v56 }
 0x166   :  { %v466_v38 = vpop.f32.mrf.mxu0  ;;  %v3338_v9 = vpop.f32.mrf.mxu1 }
 0x167   :  { %4189 = vst [vmem:[#allocation27_spill] sm:$0xff] %v3332_v21  ;;  %v661_v37 = vmul.f32 %v3335_v36, %v3261_v35 }
 0x168   :  { %v470_v18 = vpop.f32.mrf.mxu0  ;;  %v583_v5 = vpop.f32.mrf.mxu1 }
 0x169   :  { %672 = vadd.xlane.f32.xlu1 %v661_v37  ;;  %642 = vadd.xlane.f32.xlu0 %v630_v19  ;;  %v3357_v35 = vadd.f32 %v470_v18, %v3199_v63  ;;  %v3360_v43 = vadd.f32 %v583_v5, %v3202_v1  ;;  %v3364_v37 = vadd.f32 %v557_v54, %v3202_v1 }
 0x16a   :  { %v472_v31 = vpop.f32.mrf.mxu0  ;;  %v3352_v50 = vpop.f32.mrf.mxu1 }
 0x16b   :  { %4190 = vst [vmem:[#allocation28_spill] sm:$0xff] %v3357_v35  ;;  %v633_v0 = vmul.f32 %v3364_v37, %v447_v3  ;;  %v662_v4 = vmul.f32 %v3360_v43, %v433_v56 }
 0x16c   :  { %v474_v33 = vpop.f32.mrf.mxu0  ;;  %v587_v49 = vpop.f32.mrf.mxu1 }
 0x16d   :  { %v3367_v19 = vadd.f32 %v474_v33, %v3199_v63  ;;  %644 = vadd.xlane.f32.xlu1 %v631_v26  ;;  %646 = vadd.xlane.f32.xlu0 %v632_v47  ;;  %v588_v5 = vadd.f32 %v587_v49, %v3202_v1  ;;  %v453_v26 = vadd.f32 %v3292_v11, %v3207_v2 }
 0x16e   :  { %v476_v16 = vpop.f32.mrf.mxu0  ;;  %v3369_v57 = vpop.f32.mrf.mxu1 }
 0x16f   :  { %4191 = vst [vmem:[#allocation29_spill] sm:$0xff] %v3367_v19  ;;  %v663_v49 = vmul.f32 %v588_v5, %v437_v39 }
 0x170   :  { %v480_v21 = vpop.f32.mrf.mxu0  ;;  %v593_v54 = vpop.f32.mrf.mxu1 }
 0x171   :  { %v594_v14 = vadd.f32 %v593_v54, %v3202_v1  ;;  %648 = vadd.xlane.f32.xlu1 %v633_v0  ;;  %674 = vadd.xlane.f32.xlu0 %v662_v4  ;;  %v3382_v18 = vadd.f32 %v480_v21, %v3199_v63  ;;  %v457_v0 = vadd.f32 %v3307_v28, %v3207_v2 }
 0x172   :  { %v482_v33 = vpop.f32.mrf.mxu0  ;;  %v3377_v47 = vpop.f32.mrf.mxu1  ;;  %v690_v21 = vmul.f32 %v3215_v8, %v453_v26  ;;  %v473_v8 = vadd.f32 %v472_v31, %v3207_v2 }
 0x173   :  { %4192 = vst [vmem:[#allocation30_spill] sm:$0xff] %v3382_v18  ;;  %v664_v35 = vmul.f32 %v594_v14, %v443_v61  ;;  %v463_v61 = vadd.f32 %v3318_v48, %v3207_v2  ;;  %v723_v28 = vmul.f32 %v3305_v27, %v457_v0 }
 0x174   :  { %v484_v19 = vpop.f32.mrf.mxu0  ;;  %v597_v22 = vpop.f32.mrf.mxu1  ;;  %v694_v27 = vmul.f32 %v3329_v20, %v473_v8 }
 0x175   :  { %v3385_v56 = vadd.f32 %v484_v19, %v3199_v63  ;;  %v598_v54 = vadd.f32 %v597_v22, %v3202_v1  ;;  %676 = vadd.xlane.f32.xlu1 %v663_v49  ;;  %678 = vadd.xlane.f32.xlu0 %v664_v35  ;;  %v691_v63 = vmul.f32 %v3230_v17, %v457_v0  ;;  %v2664_v19 = vld [vmem:[#allocation8 + $0x20] sm:$0xff]   ;;  %v2666_v49 = vld [vmem:[#allocation8 + $0x10] sm:$0xff]  }
 0x176   :  { %v722_v1 = vmul.f32 %v3290_v10, %v453_v26  ;;  %v467_v22 = vadd.f32 %v466_v38, %v3207_v2  ;;  %v692_v39 = vmul.f32 %v3243_v25, %v463_v61  ;;  %v724_v17 = vmul.f32 %v3316_v42, %v463_v61  ;;  %v2663_v25 = vld [vmem:[#allocation8 + $0x28] sm:$0xff]   ;;  %v486_v42 = vpop.f32.mrf.mxu0 }
 0x177   :  { %v665_v4 = vmul.f32 %v598_v54, %v447_v3  ;;  %v2662_v3 = vld [vmem:[#allocation8 + $0x30] sm:$0xff]   ;;  %v477_v10 = vadd.f32 %v476_v16, %v3207_v2  ;;  %v483_v35 = vadd.f32 %v482_v33, %v3207_v2  ;;  %v487_v16 = vadd.f32 %v486_v42, %v3207_v2  ;;  %v2667_v2 = vld [vmem:[#allocation8 + $0x8] sm:$0xff]  }
 0x178   :  { %2551 = vmatprep.subr.bf16.mxu0 %v2662_v3  ;;  %v693_v48 = vmul.f32 %v3258_v34, %v467_v22  ;;  %v725_v38 = vmul.f32 %v3335_v36, %v467_v22  ;;  %v726_v34 = vmul.f32 %v3360_v43, %v473_v8 }
 0x179   :  { %680 = vadd.xlane.f32.xlu1 %v665_v4  ;;  %698 = vadd.xlane.f32.xlu0 %v690_v21  ;;  %v695_v31 = vmul.f32 %v3347_v59, %v477_v10  ;;  %v727_v36 = vmul.f32 %v588_v5, %v477_v10  ;;  %v696_v20 = vmul.f32 %v3350_v45, %v483_v35  ;;  %v2665_v59 = vld [vmem:[#allocation8 + $0x18] sm:$0xff]   ;;  %v2668_v45 = vld [vmem:[#allocation8] sm:$0xff]  }
 0x17a   :  { %2552 = vmatpush3.bf16.msra.mxu0 %v2662_v3  ;;  %v697_v33 = vmul.f32 %v3364_v37, %v487_v16  ;;  %v728_v26 = vmul.f32 %v594_v14, %v483_v35  ;;  %v729_v43 = vmul.f32 %v598_v54, %v487_v16  ;;  %v2671_v5 = vld [vmem:[#allocation10 + $0x74] ss:$8 sps:$4 sm:$0xff]  }
 0x17b   :  { %2553 = vmatprep.subr.bf16.mxu0 %v2663_v25 }
 0x17d   :  { %700 = vadd.xlane.f32.xlu1 %v691_v63  ;;  %730 = vadd.xlane.f32.xlu0 %v722_v1 }
 0x17e   :  { %2554 = vmatpush3.bf16.msra.mxu0 %v2663_v25 }
 0x17f   :  { %2555 = vmatprep.subr.bf16.mxu0 %v2664_v19 }
 0x181   :  { %732 = vadd.xlane.f32.xlu1 %v723_v28  ;;  %702 = vadd.xlane.f32.xlu0 %v692_v39 }
 0x182   :  { %2556 = vmatpush3.bf16.msra.mxu0 %v2664_v19 }
 0x183   :  { %2557 = vmatprep.subr.bf16.mxu0 %v2665_v59 }
 0x185   :  { %704 = vadd.xlane.f32.xlu1 %v693_v48  ;;  %734 = vadd.xlane.f32.xlu0 %v724_v17 }
 0x186   :  { %2558 = vmatpush3.bf16.msra.mxu0 %v2665_v59 }
 0x187   :  { %2559 = vmatprep.subr.bf16.mxu0 %v2666_v49 }
 0x189   :  { %736 = vadd.xlane.f32.xlu1 %v725_v38  ;;  %706 = vadd.xlane.f32.xlu0 %v694_v27 }
 0x18a   :  { %2560 = vmatpush3.bf16.msra.mxu0 %v2666_v49 }
 0x18b   :  { %2561 = vmatprep.subr.bf16.mxu0 %v2667_v2 }
 0x18d   :  { %708 = vadd.xlane.f32.xlu1 %v695_v31  ;;  %738 = vadd.xlane.f32.xlu0 %v726_v34 }
 0x18e   :  { %2562 = vmatpush3.bf16.msra.mxu0 %v2667_v2 }
 0x18f   :  { %2563 = vmatprep.subr.bf16.mxu0 %v2668_v45 }
 0x191   :  { %740 = vadd.xlane.f32.xlu1 %v727_v36  ;;  %710 = vadd.xlane.f32.xlu0 %v696_v20 }
 0x192   :  { %2564 = vmatpush3.bf16.msra.mxu0 %v2668_v45 }
 0x193   :  { %1467 = vmatprep.subr.bf16.mxu0 %v2671_v5 }
 0x195   :  { %712 = vadd.xlane.f32.xlu1 %v697_v33  ;;  %742 = vadd.xlane.f32.xlu0 %v728_v26 }
 0x199   :  { %744 = vadd.xlane.f32.xlu1 %v729_v43 }
 0x1c8   :  { %v635_v37 = vpop.xlane.xlu0 %634 }
 0x1c9   :  { %v650_v21 = vmul.f32 0.10206208, %v635_v37 }
 0x1cc   :  { %v637_v0 = vpop.xlane.xlu0 %636 }
 0x1cd   :  { %v651_v22 = vmul.f32 0.10206208, %v637_v0 }
 0x1d0   :  { %v639_v63 = vpop.xlane.xlu0 %638 }
 0x1d1   :  { %v652_v10 = vmul.f32 0.10206208, %v639_v63 }
 0x1d4   :  { %v641_v14 = vpop.xlane.xlu1 %640 }
 0x1d5   :  { %v653_v19 = vmul.f32 0.10206208, %v641_v14  ;;  %v210_v14 = vsub.s32 3, %v3186_v58  ;;  %v2674_v58 = vld [vmem:[#allocation10 + $0x64] ss:$8 sps:$4 sm:$0xff]  }
 0x1e6   :  { %v667_v4 = vpop.xlane.xlu1 %666 }
 0x1e7   :  { %v682_v61 = vmul.f32 0.10206208, %v667_v4 }
 0x1e9   :  { %v754_v54 = vmax.f32 %v650_v21, %v682_v61 }
 0x1ea   :  { %v669_v1 = vpop.xlane.xlu1 %668 }
 0x1eb   :  { %v762_v28 = vsub.f32 %v650_v21, %v754_v54  ;;  %v786_v39 = vsub.f32 %v682_v61, %v754_v54  ;;  %v683_v3 = vmul.f32 0.10206208, %v669_v1 }
 0x1ed   :  { %v770_v8 = vmul.f32 1.442695, %v762_v28  ;;  %v794_v48 = vmul.f32 1.442695, %v786_v39  ;;  %v755_v17 = vmax.f32 %v651_v22, %v683_v3  ;;  %v3418_v39 = vrot.slane %v3194_v62, %v210_v14 }
 0x1ee   :  { %v671_v38 = vpop.xlane.xlu0 %670 }
 0x1ef   :  { %2733 = vpow2.f32 %v770_v8  ;;  %v763_v27 = vsub.f32 %v651_v22, %v755_v17  ;;  %v787_v25 = vsub.f32 %v683_v3, %v755_v17  ;;  %v684_v35 = vmul.f32 0.10206208, %v671_v38 }
 0x1f0   :  { %2735 = vpow2.f32 %v794_v48 }
 0x1f1   :  { %v772_v31 = vmul.f32 1.442695, %v763_v27  ;;  %v796_v34 = vmul.f32 1.442695, %v787_v25  ;;  %v756_v42 = vmax.f32 %v652_v10, %v684_v35 }
 0x1f2   :  { %v673_v16 = vpop.xlane.xlu1 %672  ;;  %v643_v36 = vpop.xlane.xlu0 %642 }
 0x1f3   :  { %2737 = vpow2.f32 %v772_v31  ;;  %v764_v20 = vsub.f32 %v652_v10, %v756_v42  ;;  %v788_v33 = vsub.f32 %v684_v35, %v756_v42  ;;  %v685_v26 = vmul.f32 0.10206208, %v673_v16 }
 0x1f4   :  { %2739 = vpow2.f32 %v796_v34  ;;  %v654_v54 = vmul.f32 0.10206208, %v643_v36  ;;  %v3428_v36 = vadd.f32 %v3209_v6, %v3418_v39  ;;  %v3438_v6 = vadd.f32 %v3225_v15, %v3418_v39 }
 0x1f5   :  { %v774_v59 = vmul.f32 1.442695, %v764_v20  ;;  %v798_v43 = vmul.f32 1.442695, %v788_v33  ;;  %v757_v49 = vmax.f32 %v653_v19, %v685_v26 }
 0x1f6   :  { %v645_v2 = vpop.xlane.xlu1 %644  ;;  %v647_v45 = vpop.xlane.xlu0 %646 }
 0x1f7   :  { %2741 = vpow2.f32 %v774_v59  ;;  %v765_v5 = vsub.f32 %v653_v19, %v757_v49  ;;  %v789_v37 = vsub.f32 %v685_v26, %v757_v49  ;;  %v655_v8 = vmul.f32 0.10206208, %v645_v2 }
 0x1f8   :  { %2743 = vpow2.f32 %v798_v43  ;;  %v656_v48 = vmul.f32 0.10206208, %v647_v45 }
 0x1f9   :  { %v776_v0 = vmul.f32 1.442695, %v765_v5  ;;  %v800_v4 = vmul.f32 1.442695, %v789_v37 }
 0x1fa   :  { %v649_v21 = vpop.xlane.xlu1 %648  ;;  %v675_v61 = vpop.xlane.xlu0 %674 }
 0x1fb   :  { %2745 = vpow2.f32 %v776_v0  ;;  %v686_v63 = vmul.f32 0.10206208, %v675_v61  ;;  %v657_v45 = vmul.f32 0.10206208, %v649_v21  ;;  %v3442_v61 = vadd.f32 %v3237_v23, %v3418_v39 }
 0x1fc   :  { %v3413_v1 = vpop.eup %2733  ;;  %2747 = vpow2.f32 %v800_v4 }
 0x1fd   :  { %v3415_v22 = vpop.eup %2735  ;;  %v758_v28 = vmax.f32 %v654_v54, %v686_v63 }
 0x1fe   :  { %v810_v3 = vadd.f32 %v3415_v22, %v3413_v1  ;;  %v677_v17 = vpop.xlane.xlu1 %676  ;;  %v679_v10 = vpop.xlane.xlu0 %678 }
 0x1ff   :  { %v766_v38 = vsub.f32 %v654_v54, %v758_v28  ;;  %v790_v27 = vsub.f32 %v686_v63, %v758_v28  ;;  %v687_v25 = vmul.f32 0.10206208, %v677_v17  ;;  %v688_v35 = vmul.f32 0.10206208, %v679_v10 }
 0x200   :  { %v3422_v31 = vpop.eup %2737  ;;  %2749 = vrcp.f32 %v810_v3  ;;  %v3450_v10 = vadd.f32 %v3253_v32, %v3418_v39 }
 0x201   :  { %v3424_v34 = vpop.eup %2739  ;;  %v778_v42 = vmul.f32 1.442695, %v766_v38  ;;  %v802_v19 = vmul.f32 1.442695, %v790_v27  ;;  %v759_v62 = vmax.f32 %v655_v8, %v687_v25  ;;  %v760_v16 = vmax.f32 %v656_v48, %v688_v35 }
 0x202   :  { %v811_v20 = vadd.f32 %v3424_v34, %v3422_v31  ;;  %v681_v33 = vpop.xlane.xlu1 %680  ;;  %v699_v26 = vpop.xlane.xlu0 %698 }
 0x203   :  { %2751 = vpow2.f32 %v778_v42  ;;  %v767_v59 = vsub.f32 %v655_v8, %v759_v62  ;;  %v791_v43 = vsub.f32 %v687_v25, %v759_v62  ;;  %v768_v49 = vsub.f32 %v656_v48, %v760_v16 }
 0x204   :  { %v3432_v2 = vpop.eup %2741  ;;  %2753 = vrcp.f32 %v811_v20  ;;  %v792_v5 = vsub.f32 %v688_v35, %v760_v16  ;;  %v689_v37 = vmul.f32 0.10206208, %v681_v33  ;;  %v714_v48 = vmul.f32 0.10206208, %v699_v26 }
 0x205   :  { %v3434_v0 = vpop.eup %2743  ;;  %2755 = vpow2.f32 %v802_v19  ;;  %v780_v4 = vmul.f32 1.442695, %v767_v59  ;;  %v804_v14 = vmul.f32 1.442695, %v791_v43  ;;  %v782_v63 = vmul.f32 1.442695, %v768_v49 }
 0x206   :  { %v812_v54 = vadd.f32 %v3434_v0, %v3432_v2  ;;  %v761_v21 = vmax.f32 %v657_v45, %v689_v37  ;;  %v701_v28 = vpop.xlane.xlu1 %700  ;;  %v731_v3 = vpop.xlane.xlu0 %730  ;;  %v806_v8 = vmul.f32 1.442695, %v792_v5  ;;  %v3456_v25 = vadd.f32 %v3265_v40, %v3418_v39 }
 0x207   :  { %2757 = vpow2.f32 %v780_v4  ;;  %v746_v17 = vmul.f32 0.10206208, %v731_v3  ;;  %v715_v35 = vmul.f32 0.10206208, %v701_v28  ;;  %v3462_v43 = vadd.f32 %v3273_v46, %v3418_v39 }
 0x208   :  { %v3446_v15 = vpop.eup %2745  ;;  %2759 = vrcp.f32 %v812_v54  ;;  %v769_v23 = vsub.f32 %v657_v45, %v761_v21  ;;  %v793_v38 = vsub.f32 %v689_v37, %v761_v21  ;;  %v3466_v40 = vadd.f32 %v3277_v51, %v3418_v39 }
 0x209   :  { %v3452_v27 = vpop.eup %2747  ;;  %2761 = vpow2.f32 %v804_v14  ;;  %v878_v42 = vmax.f32 %v714_v48, %v746_v17  ;;  %v3470_v49 = vadd.f32 %v3285_v60, %v3418_v39  ;;  %v3474_v14 = vadd.f32 %v3294_v13, %v3418_v39 }
 0x20a   :  { %v813_v19 = vadd.f32 %v3452_v27, %v3446_v15  ;;  %2763 = vpow2.f32 %v782_v63  ;;  %v784_v62 = vmul.f32 1.442695, %v769_v23  ;;  %v808_v16 = vmul.f32 1.442695, %v793_v38  ;;  %v733_v32 = vpop.xlane.xlu1 %732  ;;  %v703_v20 = vpop.xlane.xlu0 %702 }
 0x20b   :  { %2765 = vpow2.f32 %v806_v8  ;;  %v886_v33 = vsub.f32 %v714_v48, %v878_v42  ;;  %v910_v26 = vsub.f32 %v746_v17, %v878_v42  ;;  %v747_v59 = vmul.f32 0.10206208, %v733_v32 }
 0x20c   :  { %2767 = vrcp.f32 %v813_v19  ;;  %v716_v28 = vmul.f32 0.10206208, %v703_v20  ;;  %v3484_v23 = vadd.f32 %v3309_v30, %v3418_v39  ;;  %v2695_v30 = vld [vmem:[#allocation11 + $0x74] ss:$8 sps:$4 sm:$0xff]  }
 0x20d   :  { %v2750_v45 = vpop.eup %2749  ;;  %2769 = vpow2.f32 %v784_v62  ;;  %v894_v5 = vmul.f32 1.442695, %v886_v33  ;;  %v918_v37 = vmul.f32 1.442695, %v910_v26  ;;  %v879_v4 = vmax.f32 %v715_v35, %v747_v59  ;;  %v2693_v33 = vld [vmem:[#allocation11 + $0x70] ss:$8 sps:$4 sm:$0xff]   ;;  %1274 = vmatprep.subr.bf16.mxu1 %v2695_v30 }
 0x20e   :  { %2771 = vpow2.f32 %v808_v16  ;;  %v705_v46 = vpop.xlane.xlu1 %704  ;;  %v735_v54 = vpop.xlane.xlu0 %734  ;;  %v834_v51 = vmul.f32 %v2750_v45, %v3413_v1  ;;  %v850_v63 = vmul.f32 %v2750_v45, %v3415_v22  ;;  %v3488_v1 = vadd.f32 %v3320_v53, %v3418_v39  ;;  %v2698_v45 = vld [vmem:[#allocation11 + $0x64] ss:$8 sps:$4 sm:$0xff]   ;;  %1275 = vmatpush1.bf16.msra.mxu1 %v2693_v33 }
 0x20f   :  { %2773 = vpow2.f32 %v894_v5  ;;  %v887_v60 = vsub.f32 %v715_v35, %v879_v4  ;;  %v911_v21 = vsub.f32 %v747_v59, %v879_v4  ;;  %v748_v8 = vmul.f32 0.10206208, %v735_v54  ;;  %1276 = vmatprep.subr.bf16.mxu1 %v2698_v45 }
 0x210   :  { %v3478_v3 = vpop.eup %2751  ;;  %2775 = vpow2.f32 %v918_v37  ;;  %v842_v48 = vmul.f32 %v834_v51, %v3428_v36  ;;  %v858_v13 = vmul.f32 %v850_v63, %v3474_v14  ;;  %v717_v53 = vmul.f32 0.10206208, %v705_v46 }
 0x211   :  { %v2754_v17 = vpop.eup %2753  ;;  %v896_v22 = vmul.f32 1.442695, %v887_v60  ;;  %v920_v38 = vmul.f32 1.442695, %v911_v21  ;;  %v880_v42 = vmax.f32 %v716_v28, %v748_v8  ;;  %v2696_v60 = vld [vmem:[#allocation11 + $0x60] ss:$8 sps:$4 sm:$0xff]   ;;  %v3506_v46 = vadd.f32 %v3338_v9, %v3418_v39 }
 0x212   :  { %v3490_v35 = vpop.eup %2755  ;;  %v737_v19 = vpop.xlane.xlu1 %736  ;;  %v835_v16 = vmul.f32 %v2754_v17, %v3422_v31  ;;  %v851_v32 = vmul.f32 %v2754_v17, %v3424_v34  ;;  %v3494_v20 = vadd.f32 %v858_v13, %v842_v48  ;;  %1277 = vmatpush1.bf16.msra.mxu1 %v2696_v60 }
 0x213   :  { %v707_v62 = vpop.xlane.xlu0 %706  ;;  %v814_v26 = vadd.f32 %v3490_v35, %v3478_v3  ;;  %2777 = vpow2.f32 %v896_v22  ;;  %v749_v59 = vmul.f32 0.10206208, %v737_v19  ;;  %v888_v37 = vsub.f32 %v716_v28, %v880_v42  ;;  %v2701_v22 = vld [vmem:[#allocation11 + $0x54] ss:$8 sps:$4 sm:$0xff]  }
 0x214   :  { %v3498_v5 = vpop.eup %2757  ;;  %2779 = vpow2.f32 %v920_v38  ;;  %v912_v4 = vsub.f32 %v748_v8, %v880_v42  ;;  %v843_v31 = vmul.f32 %v835_v16, %v3438_v6  ;;  %v718_v51 = vmul.f32 0.10206208, %v707_v62  ;;  %1278 = vmatprep.subr.bf16.mxu1 %v2701_v22 }
 0x215   :  { %v2760_v34 = vpop.eup %2759  ;;  %2781 = vrcp.f32 %v814_v26  ;;  %v881_v54 = vmax.f32 %v717_v53, %v749_v59  ;;  %v859_v63 = vmul.f32 %v851_v32, %v3484_v23  ;;  %v898_v48 = vmul.f32 1.442695, %v888_v37 }
 0x216   :  { %v3502_v21 = vpop.eup %2761  ;;  %v922_v28 = vmul.f32 1.442695, %v912_v4  ;;  %v709_v8 = vpop.xlane.xlu1 %708  ;;  %v836_v17 = vmul.f32 %v2760_v34, %v3432_v2  ;;  %v852_v42 = vmul.f32 %v2760_v34, %v3434_v0  ;;  %v2699_v0 = vld [vmem:[#allocation11 + $0x50] ss:$8 sps:$4 sm:$0xff]  }
 0x217   :  { %v739_v13 = vpop.xlane.xlu0 %738  ;;  %v3509_v38 = vpop.eup %2763  ;;  %v815_v19 = vadd.f32 %v3502_v21, %v3498_v5  ;;  %v889_v62 = vsub.f32 %v717_v53, %v881_v54  ;;  %v913_v16 = vsub.f32 %v749_v59, %v881_v54  ;;  %2783 = vpow2.f32 %v898_v48  ;;  %1279 = vmatpush1.bf16.msra.mxu1 %v2699_v0 }
 0x218   :  { %v3514_v32 = vpop.eup %2765  ;;  %v719_v9 = vmul.f32 0.10206208, %v709_v8  ;;  %v750_v33 = vmul.f32 0.10206208, %v739_v13  ;;  %v867_v30 = vadd.f32 %v859_v63, %v843_v31  ;;  %v844_v48 = vmul.f32 %v836_v17, %v3442_v61  ;;  %v2704_v31 = vld [vmem:[#allocation11 + $0x44] ss:$8 sps:$4 sm:$0xff]  }
 0x219   :  { %v2768_v26 = vpop.eup %2767  ;;  %2785 = vrcp.f32 %v815_v19  ;;  %v816_v2 = vadd.f32 %v3514_v32, %v3509_v38  ;;  %v900_v45 = vmul.f32 1.442695, %v889_v62  ;;  %v924_v37 = vmul.f32 1.442695, %v913_v16  ;;  %1280 = vmatprep.subr.bf16.mxu1 %v2704_v31 }
 0x21a   :  { %v3518_v4 = vpop.eup %2769  ;;  %2787 = vpow2.f32 %v922_v28  ;;  %v882_v53 = vmax.f32 %v718_v51, %v750_v33  ;;  %v874_v59 = vpack.c.bf16 %v867_v30, %v3494_v20  ;;  %v741_v34 = vpop.xlane.xlu1 %740  ;;  %v853_v8 = vmul.f32 %v2768_v26, %v3452_v27  ;;  %v2702_v30 = vld [vmem:[#allocation11 + $0x40] ss:$8 sps:$4 sm:$0xff]  }
 0x21b   :  { %v711_v54 = vpop.xlane.xlu0 %710  ;;  %v3522_v63 = vpop.eup %2771  ;;  %2789 = vrcp.f32 %v816_v2  ;;  %v751_v13 = vmul.f32 0.10206208, %v741_v34  ;;  %v837_v60 = vmul.f32 %v2768_v26, %v3446_v15  ;;  %v860_v27 = vmul.f32 %v852_v42, %v3488_v1  ;;  %1281 = vmatpush1.bf16.msra.mxu1 %v2702_v30 }
 0x21c   :  { %v3526_v19 = vpop.eup %2773  ;;  %v817_v28 = vadd.f32 %v3522_v63, %v3518_v4  ;;  %2791 = vpow2.f32 %v900_v45  ;;  %v890_v20 = vsub.f32 %v718_v51, %v882_v53  ;;  %v914_v62 = vsub.f32 %v750_v33, %v882_v53  ;;  %2565 = vmatprep.mubr.bf16.mxu0 %v874_v59  ;;  %v2707_v33 = vld [vmem:[#allocation11 + $0x34] ss:$8 sps:$4 sm:$0xff]  }
 0x21d   :  { %v3530_v17 = vpop.eup %2775  ;;  %2793 = vpow2.f32 %v924_v37  ;;  %v883_v22 = vmax.f32 %v719_v9, %v751_v13  ;;  %v845_v16 = vmul.f32 %v837_v60, %v3450_v10  ;;  %v720_v37 = vmul.f32 0.10206208, %v711_v54  ;;  %1282 = vmatprep.subr.bf16.mxu1 %v2707_v33  ;;  %v2708_v33 = vld [vmem:[#allocation11 + $0x20] ss:$8 sps:$4 sm:$0xff]  }
 0x21e   :  { %2795 = vrcp.f32 %v817_v28  ;;  %v934_v15 = vadd.f32 %v3530_v17, %v3526_v19  ;;  %v902_v26 = vmul.f32 1.442695, %v890_v20  ;;  %v926_v2 = vmul.f32 1.442695, %v914_v62  ;;  %v713_v45 = vpop.xlane.xlu1 %712 }
 0x21f   :  { %v743_v51 = vpop.xlane.xlu0 %742  ;;  %v891_v53 = vsub.f32 %v719_v9, %v883_v22  ;;  %v915_v59 = vsub.f32 %v751_v13, %v883_v22  ;;  %v3540_v42 = vadd.f32 %v3352_v50, %v3418_v39  ;;  %v861_v0 = vmul.f32 %v853_v8, %v3506_v46  ;;  %v2705_v9 = vld [vmem:[#allocation11 + $0x30] ss:$8 sps:$4 sm:$0xff]  }
 0x220   :  { %v752_v34 = vmul.f32 0.10206208, %v743_v51  ;;  %v3536_v11 = vpop.eup %2777  ;;  %2797 = vrcp.f32 %v934_v15  ;;  %v868_v60 = vadd.f32 %v860_v27, %v844_v48  ;;  %v721_v22 = vmul.f32 0.10206208, %v713_v45  ;;  %v2710_v15 = vld [vmem:[#allocation11 + $0x24] ss:$8 sps:$4 sm:$0xff]   ;;  %1283 = vmatpush1.bf16.msra.mxu1 %v2705_v9 }
 0x221   :  { %v3543_v28 = vpop.eup %2779  ;;  %2799 = vpow2.f32 %v902_v26  ;;  %v904_v20 = vmul.f32 1.442695, %v891_v53  ;;  %v928_v31 = vmul.f32 1.442695, %v915_v59  ;;  %v869_v50 = vadd.f32 %v861_v0, %v845_v16  ;;  %v2669_v26 = vld [vmem:[#allocation10 + $0x70] ss:$8 sps:$4 sm:$0xff]   ;;  %1284 = vmatprep.subr.bf16.mxu1 %v2710_v15 }
 0x222   :  { %v884_v62 = vmax.f32 %v720_v37, %v752_v34  ;;  %v2782_v54 = vpop.eup %2781  ;;  %v935_v13 = vadd.f32 %v3543_v28, %v3536_v11  ;;  %2801 = vpow2.f32 %v926_v2  ;;  %v745_v51 = vpop.xlane.xlu1 %744  ;;  %v2672_v9 = vld [vmem:[#allocation10 + $0x60] ss:$8 sps:$4 sm:$0xff]   ;;  %v2677_v15 = vld [vmem:[#allocation10 + $0x54] ss:$8 sps:$4 sm:$0xff]  }
 0x223   :  { %2803 = vpow2.f32 %v904_v20  ;;  %v753_v27 = vmul.f32 0.10206208, %v745_v51  ;;  %v875_v53 = vpack.c.bf16 %v869_v50, %v868_v60  ;;  %v838_v30 = vmul.f32 %v2782_v54, %v3478_v3 }
 0x224   :  { %v892_v48 = vsub.f32 %v720_v37, %v884_v62  ;;  %v916_v8 = vsub.f32 %v752_v34, %v884_v62  ;;  %2805 = vrcp.f32 %v935_v13  ;;  %v854_v59 = vmul.f32 %v2782_v54, %v3490_v35  ;;  %v3549_v18 = vpop.eup %2783  ;;  %v2713_v35 = vld [vmem:[#allocation11 + $0x14] ss:$8 sps:$4 sm:$0xff]   ;;  %v599_v13 = vpop.f32.mrf.mxu1  ;;  %1285 = vmatpush1.bf16.msra.mxu1 %v2708_v33 }
 0x225   :  { %2807 = vpow2.f32 %v928_v31  ;;  %v885_v45 = vmax.f32 %v721_v22, %v753_v27  ;;  %v3553_v37 = vadd.f32 %v3369_v57, %v3418_v39  ;;  %2566 = vmatmul.mubr.bf16.vlgmr.msra.gmra.mxu0 %v875_v53  ;;  %v846_v34 = vmul.f32 %v838_v30, %v3456_v25  ;;  %1286 = vmatprep.subr.bf16.mxu1 %v2713_v35 }
 0x226   :  { %v906_v2 = vmul.f32 1.442695, %v892_v48  ;;  %v930_v16 = vmul.f32 1.442695, %v916_v8  ;;  %v2786_v0 = vpop.eup %2785  ;;  %v862_v3 = vmul.f32 %v854_v59, %v3540_v42  ;;  %1468 = vmatpush1.bf16.msra.mxu0 %v2669_v26  ;;  %v2711_v26 = vld [vmem:[#allocation11 + $0x10] ss:$8 sps:$4 sm:$0xff]   ;;  %v3571_v30 = vadd.f32 %v3377_v47, %v3418_v39 }
 0x227   :  { %v3557_v60 = vpop.eup %2787  ;;  %v893_v20 = vsub.f32 %v721_v22, %v885_v45  ;;  %v917_v31 = vsub.f32 %v753_v27, %v885_v45  ;;  %v839_v62 = vmul.f32 %v2786_v0, %v3498_v5  ;;  %v855_v50 = vmul.f32 %v2786_v0, %v3502_v21  ;;  %1469 = vmatprep.subr.bf16.mxu0 %v2674_v58  ;;  %v2675_v45 = vld [vmem:[#allocation10 + $0x50] ss:$8 sps:$4 sm:$0xff]  }
 0x228   :  { %2809 = vpow2.f32 %v906_v2  ;;  %v2790_v54 = vpop.eup %2789  ;;  %v936_v57 = vadd.f32 %v3557_v60, %v3549_v18  ;;  %v870_v51 = vadd.f32 %v862_v3, %v846_v34  ;;  %v3576_v2 = vadd.f32 %v599_v13, %v3418_v39  ;;  %1287 = vmatpush1.bf16.msra.mxu1 %v2711_v26 }
 0x229   :  { %2811 = vpow2.f32 %v930_v16  ;;  %v3563_v48 = vpop.eup %2791  ;;  %v908_v8 = vmul.f32 1.442695, %v893_v20  ;;  %v932_v22 = vmul.f32 1.442695, %v917_v31  ;;  %v847_v27 = vmul.f32 %v839_v62, %v3462_v43 }
 0x22a   :  { %v840_v5 = vmul.f32 %v2790_v54, %v3509_v38  ;;  %v3567_v53 = vpop.eup %2793  ;;  %2813 = vrcp.f32 %v936_v57  ;;  %v863_v58 = vmul.f32 %v855_v50, %v3553_v37  ;;  %v856_v21 = vmul.f32 %v2790_v54, %v3514_v32  ;;  %1470 = vmatpush1.bf16.msra.mxu0 %v2672_v9  ;;  %v2680_v32 = vld [vmem:[#allocation10 + $0x44] ss:$8 sps:$4 sm:$0xff]   ;;  %v2678_v54 = vld [vmem:[#allocation10 + $0x40] ss:$8 sps:$4 sm:$0xff]  }
 0x22b   :  { %v2796_v59 = vpop.eup %2795  ;;  %v937_v38 = vadd.f32 %v3567_v53, %v3563_v48  ;;  %2815 = vpow2.f32 %v908_v8  ;;  %1471 = vmatprep.subr.bf16.mxu0 %v2677_v15  ;;  %v2683_v15 = vld [vmem:[#allocation10 + $0x34] ss:$8 sps:$4 sm:$0xff]  }
 0x22c   :  { %v848_v16 = vmul.f32 %v840_v5, %v3466_v40  ;;  %2817 = vpow2.f32 %v932_v22  ;;  %v871_v47 = vadd.f32 %v863_v58, %v847_v27  ;;  %v841_v33 = vmul.f32 %v2796_v59, %v3518_v4 }
 0x22d   :  { %v857_v0 = vmul.f32 %v2796_v59, %v3522_v63  ;;  %v2798_v34 = vpop.eup %2797  ;;  %2819 = vrcp.f32 %v937_v38  ;;  %v864_v39 = vmul.f32 %v856_v21, %v3571_v30  ;;  %v2681_v21 = vld [vmem:[#allocation10 + $0x30] ss:$8 sps:$4 sm:$0xff]  }
 0x22e   :  { %v3584_v3 = vpop.eup %2799  ;;  %v876_v35 = vpack.c.bf16 %v871_v47, %v870_v51  ;;  %v849_v20 = vmul.f32 %v841_v33, %v3470_v49  ;;  %v958_v62 = vmul.f32 %v2798_v34, %v3526_v19  ;;  %v974_v63 = vmul.f32 %v2798_v34, %v3530_v17  ;;  %1472 = vmatpush1.bf16.msra.mxu0 %v2675_v45 }
 0x22f   :  { %v865_v31 = vmul.f32 %v857_v0, %v3576_v2  ;;  %v3589_v9 = vpop.eup %2801  ;;  %v872_v4 = vadd.f32 %v864_v39, %v848_v16  ;;  %1473 = vmatprep.subr.bf16.mxu0 %v2680_v32 }
 0x230   :  { %v3592_v13 = vpop.eup %2803  ;;  %v938_v57 = vadd.f32 %v3589_v9, %v3584_v3  ;;  %2569 = vmatprep.mubr.bf16.mxu0 %v876_v35  ;;  %v966_v51 = vmul.f32 %v958_v62, %v3428_v36  ;;  %v982_v19 = vmul.f32 %v974_v63, %v3474_v14  ;;  %v2686_v14 = vld [vmem:[#allocation10 + $0x24] ss:$8 sps:$4 sm:$0xff]   ;;  %v2687_v63 = vld [vmem:[#allocation10 + $0x10] ss:$8 sps:$4 sm:$0xff]  }
 0x231   :  { %v873_v50 = vadd.f32 %v865_v31, %v849_v20  ;;  %v2806_v8 = vpop.eup %2805 }
 0x232   :  { %v2808_v22 = vpop.eup %2807  ;;  %2821 = vrcp.f32 %v938_v57  ;;  %v959_v17 = vmul.f32 %v2806_v8, %v3536_v11  ;;  %v975_v5 = vmul.f32 %v2806_v8, %v3543_v28  ;;  %v990_v58 = vadd.f32 %v982_v19, %v966_v51  ;;  %1474 = vmatpush1.bf16.msra.mxu0 %v2678_v54  ;;  %v2684_v28 = vld [vmem:[#allocation10 + $0x20] ss:$8 sps:$4 sm:$0xff]  }
 0x233   :  { %v877_v27 = vpack.c.bf16 %v873_v50, %v872_v4  ;;  %v939_v26 = vadd.f32 %v2808_v22, %v3592_v13  ;;  %1475 = vmatprep.subr.bf16.mxu0 %v2683_v15 }
 0x234   :  { %v967_v36 = vmul.f32 %v959_v17, %v3438_v6  ;;  %v983_v38 = vmul.f32 %v975_v5, %v3484_v23  ;;  %v2689_v6 = vld [vmem:[#allocation10 + $0x14] ss:$8 sps:$4 sm:$0xff]  }
 0x235   :  { %v2810_v59 = vpop.eup %2809  ;;  %2570 = vmatmul.mubr.bf16.gmra.mxu0 %v877_v27  ;;  %2823 = vrcp.f32 %v939_v26 }
 0x236   :  { %v2812_v16 = vpop.eup %2811  ;;  %v991_v47 = vadd.f32 %v983_v38, %v967_v36  ;;  %1476 = vmatpush1.bf16.msra.mxu0 %v2681_v21 }
 0x237   :  { %v940_v45 = vadd.f32 %v2812_v16, %v2810_v59  ;;  %v2814_v11 = vpop.eup %2813  ;;  %1477 = vmatprep.subr.bf16.mxu0 %v2686_v14 }
 0x238   :  { %v2816_v33 = vpop.eup %2815  ;;  %v998_v0 = vpack.c.bf16 %v991_v47, %v990_v58  ;;  %v960_v32 = vmul.f32 %v2814_v11, %v3549_v18  ;;  %v976_v34 = vmul.f32 %v2814_v11, %v3557_v60  ;;  %v2692_v60 = vld [vmem:[#allocation10 + $0x4] ss:$8 sps:$4 sm:$0xff]   ;;  %v4202_v11 = vld [vmem:[#allocation26_spill] sm:$0xff] }
 0x239   :  { %2825 = vrcp.f32 %v940_v45  ;;  %v2818_v39 = vpop.eup %2817 }
 0x23a   :  { %v2820_v23 = vpop.eup %2819  ;;  %v941_v35 = vadd.f32 %v2818_v39, %v2816_v33  ;;  %2573 = vmatprep.mubr.bf16.mxu0 %v998_v0  ;;  %v968_v20 = vmul.f32 %v960_v32, %v3442_v61  ;;  %v984_v31 = vmul.f32 %v976_v34, %v3488_v1  ;;  %1478 = vmatpush1.bf16.msra.mxu0 %v2684_v28  ;;  %v4205_v28 = vld [vmem:[#allocation28_spill] sm:$0xff] }
 0x23b   :  { %v961_v62 = vmul.f32 %v2820_v23, %v3563_v48  ;;  %v977_v4 = vmul.f32 %v2820_v23, %v3567_v53  ;;  %1479 = vmatprep.subr.bf16.mxu0 %v2689_v6  ;;  %v2690_v48 = vld [vmem:[#allocation10] ss:$8 sps:$4 sm:$0xff]  }
 0x23c   :  { %2827 = vrcp.f32 %v941_v35  ;;  %v992_v18 = vadd.f32 %v984_v31, %v968_v20  ;;  %v2411_v6 = vld [vmem:[%s4164_s5] ss:$0 sm:$0xff] }
 0x23d   :  { %v969_v54 = vmul.f32 %v961_v62, %v3450_v10  ;;  %v985_v57 = vmul.f32 %v977_v4, %v3506_v46 }
 0x23e   :  { %1480 = vmatpush1.bf16.msra.mxu0 %v2687_v63 }
 0x23f   :  { %v2822_v50 = vpop.eup %2821  ;;  %v993_v51 = vadd.f32 %v985_v57, %v969_v54  ;;  %1481 = vmatprep.subr.bf16.mxu0 %v2692_v60 }
 0x240   :  { %v962_v61 = vmul.f32 %v2822_v50, %v3584_v3  ;;  %v978_v1 = vmul.f32 %v2822_v50, %v3589_v9 }
 0x241   :  { %v999_v53 = vpack.c.bf16 %v993_v51, %v992_v18 }
 0x242   :  { %v2824_v15 = vpop.eup %2823  ;;  %v970_v8 = vmul.f32 %v962_v61, %v3456_v25  ;;  %v986_v19 = vmul.f32 %v978_v1, %v3540_v42  ;;  %1482 = vmatpush1.bf16.msra.mxu0 %v2690_v48 }
 0x243   :  { %2574 = vmatmul.mubr.bf16.gmra.mxu0 %v999_v53  ;;  %v963_v10 = vmul.f32 %v2824_v15, %v3592_v13  ;;  %v979_v27 = vmul.f32 %v2824_v15, %v2808_v22 }
 0x244   :  { %v994_v46 = vadd.f32 %v986_v19, %v970_v8 }
 0x245   :  { %v971_v5 = vmul.f32 %v963_v10, %v3462_v43  ;;  %v987_v3 = vmul.f32 %v979_v27, %v3553_v37  ;;  %v4193_v37 = vmov 0  }
 0x246   :  { %v2826_v17 = vpop.eup %2825 }
 0x247   :  { %v964_v9 = vmul.f32 %v2826_v17, %v2810_v59  ;;  %v980_v26 = vmul.f32 %v2826_v17, %v2812_v16  ;;  %v995_v58 = vadd.f32 %v987_v3, %v971_v5  ;;  %v2716_v59 = vld [vmem:[#allocation11 + $0x4] ss:$8 sps:$4 sm:$0xff]  }
 0x248   :  { %1288 = vmatprep.subr.bf16.mxu1 %v2716_v59  ;;  %v4201_v16 = vld [vmem:[#allocation27_spill] sm:$0xff]  ;;  %v2725_v59 = vld [vmem:[#allocation13 + $0x58] sm:$0xff]  }
 0x249   :  { %v972_v21 = vmul.f32 %v964_v9, %v3466_v40  ;;  %v988_v25 = vmul.f32 %v980_v26, %v3571_v30  ;;  %v2828_v36 = vpop.eup %2827  ;;  %v1000_v42 = vpack.c.bf16 %v995_v58, %v994_v46  ;;  %v4194_v40 = vpack.c.bf16 %v3221_v12, %v3212_v7  ;;  %v4198_v12 = vld [vmem:[#allocation25_spill] sm:$0xff] }
 0x24a   :  { %v965_v38 = vmul.f32 %v2828_v36, %v2816_v33  ;;  %v981_v14 = vmul.f32 %v2828_v36, %v2818_v39  ;;  %v4195_v30 = vpack.c.bf16 %v3249_v29, %v3240_v24  ;;  %v4197_v7 = vpack.c.bf16 %v3283_v55, %v3280_v52  ;;  %v4199_v24 = vld [vmem:[#allocation24_spill] sm:$0xff]  ;;  %v4207_v52 = vld [vmem:[#allocation30_spill] sm:$0xff] }
 0x24b   :  { %v996_v13 = vadd.f32 %v988_v25, %v972_v21  ;;  %2577 = vmatprep.mubr.bf16.mxu0 %v1000_v42  ;;  %v4200_v29 = vpack.c.bf16 %v4198_v12, %v4199_v24  ;;  %v4208_v55 = vpack.c.bf16 %v3385_v56, %v4207_v52  ;;  %v2727_v12 = vld [vmem:[#allocation13 + $0x50] sm:$0xff]  }
 0x24c   :  { %v973_v22 = vmul.f32 %v965_v38, %v3470_v49  ;;  %v989_v45 = vmul.f32 %v981_v14, %v3576_v2  ;;  %v2714_v49 = vld [vmem:[#allocation11] ss:$8 sps:$4 sm:$0xff]   ;;  %v4196_v2 = vpack.c.bf16 %v3271_v44, %v3268_v41  ;;  %v4203_v41 = vpack.c.bf16 %v4201_v16, %v4202_v11  ;;  %v4204_v44 = vld [vmem:[#allocation29_spill] sm:$0xff] }
 0x24d   :  { %1289 = vmatpush1.bf16.msra.mxu1 %v2714_v49  ;;  %v4206_v33 = vpack.c.bf16 %v4204_v44, %v4205_v28  ;;  %v2728_v24 = vld [vmem:[#allocation13 + $0x10] sm:$0xff]   ;;  %v2729_v16 = vld [vmem:[#allocation13 + $0x48] sm:$0xff]   ;;  %v2731_v44 = vld [vmem:[#allocation13 + $0x40] sm:$0xff]  }
 0x24e   :  { %v997_v43 = vadd.f32 %v989_v45, %v973_v22  ;;  %v2718_v22 = vld [vmem:[#allocation13 + $0x38] sm:$0xff]   ;;  %v2719_v45 = vld [vmem:[#allocation13 + $0x70] sm:$0xff]   ;;  %v2730_v11 = vld [vmem:[#allocation13 + $0x8] sm:$0xff]  }
 0x24f   :  { %v2732_v28 = vld [vmem:[#allocation13] sm:$0xff]  }
 0x250   :  { %v1001_v47 = vpack.c.bf16 %v997_v43, %v996_v13  ;;  %v2717_v13 = vld [vmem:[#allocation13 + $0x78] sm:$0xff]   ;;  %v2720_v43 = vld [vmem:[#allocation13 + $0x30] sm:$0xff]  }
 0x251   :  { %2581 = vmatprep.subr.bf16.mxu1 %v2717_v13  ;;  %2485 = vmatprep.subr.bf16.mxu0 %v2717_v13 }
 0x252   :  { %2578 = vmatmul.mubr.bf16.gmra.mxu0 %v1001_v47  ;;  %v2721_v47 = vld [vmem:[#allocation13 + $0x68] sm:$0xff]  }
 0x253   :  { %1499 = vmatprep.mubr.bf16.mxu0 %v4193_v37 }
 0x25a   :  { %1500 = vmatmul.mubr.bf16.vlgmr.msra.gmra.mxu0 %v4194_v40  ;;  %v2722_v40 = vld [vmem:[#allocation13 + $0x28] sm:$0xff]  }
 0x25b   :  { %1509 = vmatprep.mubr.bf16.mxu0 %v4193_v37  ;;  %2486 = vmatpush3.bf16.msra.mxu0 %v2718_v22 }
 0x25c   :  { %2487 = vmatprep.subr.bf16.mxu0 %v2719_v45 }
 0x25f   :  { %2488 = vmatpush3.bf16.msra.mxu0 %v2720_v43 }
 0x260   :  { %2489 = vmatprep.subr.bf16.mxu0 %v2721_v47 }
 0x262   :  { %1510 = vmatmul.mubr.bf16.gmra.mxu0 %v4195_v30  ;;  %v2724_v30 = vld [vmem:[#allocation13 + $0x20] sm:$0xff]  }
 0x263   :  { %1519 = vmatprep.mubr.bf16.mxu0 %v4193_v37  ;;  %2490 = vmatpush3.bf16.msra.mxu0 %v2722_v40 }
 0x26a   :  { %1520 = vmatmul.mubr.bf16.gmra.mxu0 %v4196_v2  ;;  %v2726_v2 = vld [vmem:[#allocation13 + $0x18] sm:$0xff]  }
 0x26b   :  { %1529 = vmatprep.mubr.bf16.mxu0 %v4193_v37 }
 0x272   :  { %1530 = vmatmul.mubr.bf16.gmra.mxu0 %v4197_v7 }
 0x273   :  { %1539 = vmatprep.mubr.bf16.mxu0 %v4193_v37 }
 0x27a   :  { %1540 = vmatmul.mubr.bf16.gmra.mxu0 %v4200_v29 }
 0x27b   :  { %1549 = vmatprep.mubr.bf16.mxu0 %v4193_v37 }
 0x282   :  { %1550 = vmatmul.mubr.bf16.gmra.mxu0 %v4203_v41 }
 0x283   :  { %1559 = vmatprep.mubr.bf16.mxu0 %v4193_v37 }
 0x28a   :  { %1560 = vmatmul.mubr.bf16.gmra.mxu0 %v4206_v33 }
 0x28b   :  { %1569 = vmatprep.mubr.bf16.mxu0 %v4193_v37 }
 0x292   :  { %1570 = vmatmul.mubr.bf16.gmra.mxu0 %v4208_v55 }
 0x2e5   :  { %v2567_v0 = vpop.f32.mrf.mxu0 }
 0x2e6   :  { %v1116_v4 = vadd.f32 %v2567_v0, %v2411_v6 }
 0x2e7   :  { %v1107_v32 = vpop.f32.mrf.mxu0 }
 0x2e8   :  { %v1108_v23 = vadd.f32 %v2411_v6, %v1107_v32 }
 0x2e9   :  { %v2568_v34 = vpop.f32.mrf.mxu0 }
 0x2ea   :  { %v1119_v31 = vadd.f32 %v2568_v34, %v2411_v6 }
 0x2eb   :  { %v1110_v39 = vpop.f32.mrf.mxu0 }
 0x2ec   :  { %v1111_v35 = vadd.f32 %v2411_v6, %v1110_v39  ;;  %v1171_v56 = vpack.c.bf16 %v1119_v31, %v1116_v4 }
 0x2ee   :  { %v1170_v20 = vpack.c.bf16 %v1111_v35, %v1108_v23 }
 0x2f0   :  { %1307 = vmatmul.mubr.bf16.vlgmr.msra.gmra.mxu1 %v1170_v20 }
 0x2f1   :  { %1316 = vmatprep.mubr.bf16.mxu1 %v4193_v37  ;;  %2589 = vmatpush3.bf16.msra.mxu1 %v2718_v22 }
 0x2f2   :  { %2582 = vmatprep.subr.bf16.mxu1 %v2719_v45 }
 0x2f5   :  { %v2571_v62 = vpop.f32.mrf.mxu0  ;;  %2590 = vmatpush3.bf16.msra.mxu1 %v2720_v43 }
 0x2f6   :  { %v1132_v1 = vadd.f32 %v2571_v62, %v2411_v6  ;;  %2583 = vmatprep.subr.bf16.mxu1 %v2721_v47 }
 0x2f7   :  { %v1123_v63 = vpop.f32.mrf.mxu0 }
 0x2f8   :  { %1317 = vmatmul.mubr.bf16.gmra.mxu1 %v1171_v56  ;;  %v1124_v54 = vadd.f32 %v2411_v6, %v1123_v63 }
 0x2f9   :  { %v2572_v18 = vpop.f32.mrf.mxu0  ;;  %1326 = vmatprep.mubr.bf16.mxu1 %v4193_v37  ;;  %2591 = vmatpush3.bf16.msra.mxu1 %v2722_v40 }
 0x2fa   :  { %v1135_v51 = vadd.f32 %v2572_v18, %v2411_v6 }
 0x2fb   :  { %v1126_v60 = vpop.f32.mrf.mxu0 }
 0x2fc   :  { %v1127_v57 = vadd.f32 %v2411_v6, %v1126_v60  ;;  %v1173_v53 = vpack.c.bf16 %v1135_v51, %v1132_v1 }
 0x2fe   :  { %v1172_v50 = vpack.c.bf16 %v1127_v57, %v1124_v54  ;;  %v1580_v54 = vld [vmem:[%s4167_s8] sm:$0x3] }
 0x300   :  { %1327 = vmatmul.mubr.bf16.gmra.mxu1 %v1172_v50 }
 0x301   :  { %1336 = vmatprep.mubr.bf16.mxu1 %v4193_v37 }
 0x303   :  { %v2575_v61 = vpop.f32.mrf.mxu0 }
 0x304   :  { %v1148_v3 = vadd.f32 %v2575_v61, %v2411_v6 }
 0x305   :  { %v1139_v48 = vpop.f32.mrf.mxu0 }
 0x306   :  { %v1140_v10 = vadd.f32 %v2411_v6, %v1139_v48  ;;  %v4209_v48 = vld [vmem:[#allocation23_spill] sm:$0xff] }
 0x307   :  { %v2576_v15 = vpop.f32.mrf.mxu0 }
 0x308   :  { %1337 = vmatmul.mubr.bf16.gmra.mxu1 %v1173_v53  ;;  %v1151_v17 = vadd.f32 %v2576_v15, %v2411_v6  ;;  %v4210_v53 = vsub.s32 0, %v4209_v48 }
 0x309   :  { %v1142_v8 = vpop.f32.mrf.mxu0  ;;  %1346 = vmatprep.mubr.bf16.mxu1 %v4193_v37 }
 0x30a   :  { %v1143_v19 = vadd.f32 %v2411_v6, %v1142_v8  ;;  %v1175_v26 = vpack.c.bf16 %v1151_v17, %v1148_v3  ;;  %v3683_v15 = vrot.slane %v1580_v54, %v4210_v53 }
 0x30c   :  { %v1174_v27 = vpack.c.bf16 %v1143_v19, %v1140_v10 }
 0x310   :  { %1347 = vmatmul.mubr.bf16.gmra.mxu1 %v1174_v27 }
 0x311   :  { %1356 = vmatprep.mubr.bf16.mxu1 %v4193_v37 }
 0x312   :  { %v2579_v46 = vpop.f32.mrf.mxu0 }
 0x313   :  { %v1164_v38 = vadd.f32 %v2579_v46, %v2411_v6  ;;  %v4211_v46 = vsub.s32 1, %v4209_v48 }
 0x314   :  { %v1155_v5 = vpop.f32.mrf.mxu0 }
 0x315   :  { %v1156_v25 = vadd.f32 %v2411_v6, %v1155_v5  ;;  %v3687_v17 = vrot.slane %v1580_v54, %v4211_v46 }
 0x316   :  { %v2580_v9 = vpop.f32.mrf.mxu0 }
 0x317   :  { %v1167_v42 = vadd.f32 %v2580_v9, %v2411_v6 }
 0x318   :  { %v1158_v58 = vpop.f32.mrf.mxu0  ;;  %1357 = vmatmul.mubr.bf16.gmra.mxu1 %v1175_v26 }
 0x319   :  { %v1159_v21 = vadd.f32 %v2411_v6, %v1158_v58  ;;  %1366 = vmatprep.mubr.bf16.mxu1 %v4193_v37  ;;  %v1177_v14 = vpack.c.bf16 %v1167_v42, %v1164_v38 }
 0x31a   :  { %v1501_v49 = vpop.f32.mrf.mxu0 }
 0x31b   :  { %v1176_v36 = vpack.c.bf16 %v1159_v21, %v1156_v25 }
 0x31c   :  { %v1503_v7 = vpop.f32.mrf.mxu0 }
 0x31e   :  { %v1505_v29 = vpop.f32.mrf.mxu0 }
 0x320   :  { %1367 = vmatmul.mubr.bf16.gmra.mxu1 %v1176_v36  ;;  %v1507_v41 = vpop.f32.mrf.mxu0 }
 0x321   :  { %1376 = vmatprep.mubr.bf16.mxu1 %v4193_v37  ;;  %v2723_v37 = vld [vmem:[#allocation13 + $0x60] sm:$0xff]  }
 0x322   :  { %2584 = vmatprep.subr.bf16.mxu1 %v2723_v37  ;;  %2491 = vmatprep.subr.bf16.mxu0 %v2723_v37  ;;  %v1511_v33 = vpop.f32.mrf.mxu0 }
 0x323   :  { %2592 = vmatpush3.bf16.msra.mxu1 %v2724_v30  ;;  %2492 = vmatpush3.bf16.msra.mxu0 %v2724_v30 }
 0x324   :  { %2585 = vmatprep.subr.bf16.mxu1 %v2725_v59  ;;  %2493 = vmatprep.subr.bf16.mxu0 %v2725_v59  ;;  %v1513_v52 = vpop.f32.mrf.mxu0 }
 0x326   :  { %v1515_v55 = vpop.f32.mrf.mxu0 }
 0x327   :  { %2593 = vmatpush3.bf16.msra.mxu1 %v2726_v2  ;;  %2494 = vmatpush3.bf16.msra.mxu0 %v2726_v2 }
 0x328   :  { %1377 = vmatmul.mubr.bf16.gmra.mxu1 %v1177_v14  ;;  %2495 = vmatprep.subr.bf16.mxu0 %v2727_v12  ;;  %v1517_v0 = vpop.f32.mrf.mxu0 }
 0x329   :  { %2586 = vmatprep.subr.bf16.mxu1 %v2727_v12 }
 0x32a   :  { %v1521_v32 = vpop.f32.mrf.mxu0 }
 0x32b   :  { %2496 = vmatpush3.bf16.msra.mxu0 %v2728_v24  ;;  %2594 = vmatpush3.bf16.msra.mxu1 %v2728_v24 }
 0x32c   :  { %2497 = vmatprep.subr.bf16.mxu0 %v2729_v16  ;;  %2587 = vmatprep.subr.bf16.mxu1 %v2729_v16  ;;  %v1523_v34 = vpop.f32.mrf.mxu0 }
 0x32e   :  { %v1525_v6 = vpop.f32.mrf.mxu0 }
 0x32f   :  { %2498 = vmatpush3.bf16.msra.mxu0 %v2730_v11  ;;  %2595 = vmatpush3.bf16.msra.mxu1 %v2730_v11 }
 0x330   :  { %2499 = vmatprep.subr.bf16.mxu0 %v2731_v44  ;;  %2588 = vmatprep.subr.bf16.mxu1 %v2731_v44  ;;  %v1527_v39 = vpop.f32.mrf.mxu0 }
 0x332   :  { %v3664_v23 = vpop.f32.mrf.mxu0 }
 0x333   :  { %2500 = vmatpush3.bf16.msra.mxu0 %v2732_v28  ;;  %2596 = vmatpush3.bf16.msra.mxu1 %v2732_v28 }
 0x334   :  { %v3666_v35 = vpop.f32.mrf.mxu0 }
 0x336   :  { %v3668_v20 = vpop.f32.mrf.mxu0 }
 0x338   :  { %v3670_v31 = vpop.f32.mrf.mxu0 }
 0x33a   :  { %v3672_v4 = vpop.f32.mrf.mxu0 }
 0x33c   :  { %v3674_v18 = vpop.f32.mrf.mxu0 }
 0x33e   :  { %v3679_v50 = vpop.f32.mrf.mxu0 }
 0x340   :  { %v3689_v5 = vpop.f32.mrf.mxu0 }
 0x342   :  { %v3706_v22 = vpop.f32.mrf.mxu0 }
 0x344   :  { %v3732_v11 = vpop.f32.mrf.mxu0 }
 0x3b0   :  { %v1308_v62 = vpop.f32.mrf.mxu1 }
 0x3b1   :  { %v1502_v1 = vadd.f32 %v1501_v49, %v1308_v62 }
 0x3b2   :  { %v1310_v63 = vpop.f32.mrf.mxu1 }
 0x3b3   :  { %v1504_v27 = vadd.f32 %v1503_v7, %v1310_v63  ;;  %v3695_v21 = vadd.f32 %v3683_v15, %v1502_v1  ;;  %v3757_v1 = vpop.f32.mrf.mxu0 }
 0x3b4   :  { %v1312_v56 = vpop.f32.mrf.mxu1 }
 0x3b5   :  { %v1506_v51 = vadd.f32 %v1505_v29, %v1312_v56  ;;  %v3704_v14 = vadd.f32 %v3687_v17, %v1504_v27  ;;  %v1681_v37 = vmul.f32 %v3695_v21, %v3695_v21 }
 0x3b6   :  { %v1314_v60 = vpop.f32.mrf.mxu1 }
 0x3b7   :  { %v1508_v8 = vadd.f32 %v1507_v41, %v1314_v60  ;;  %v3692_v3 = vadd.f32 %v3683_v15, %v1506_v51  ;;  %v1682_v24 = vmul.f32 %v3704_v14, %v3704_v14 }
 0x3b8   :  { %v1318_v57 = vpop.f32.mrf.mxu1 }
 0x3b9   :  { %v1512_v19 = vadd.f32 %v1511_v33, %v1318_v57  ;;  %v3698_v25 = vadd.f32 %v3687_v17, %v1508_v8  ;;  %v1683_v45 = vmul.f32 %v3692_v3, %v3692_v3  ;;  %v1624_v29 = vadd.f32 %v3692_v3, %v3695_v21 }
 0x3ba   :  { %v1320_v61 = vpop.f32.mrf.mxu1 }
 0x3bb   :  { %v1514_v9 = vadd.f32 %v1513_v52, %v1320_v61  ;;  %v3701_v36 = vadd.f32 %v3683_v15, %v1512_v19  ;;  %v1684_v30 = vmul.f32 %v3698_v25, %v3698_v25  ;;  %v1713_v41 = vadd.f32 %v1683_v45, %v1681_v37  ;;  %v3776_v37 = vpop.f32.mrf.mxu0 }
 0x3bc   :  { %v1322_v10 = vpop.f32.mrf.mxu1 }
 0x3bd   :  { %v1516_v26 = vadd.f32 %v1515_v55, %v1322_v10  ;;  %v3711_v43 = vadd.f32 %v3687_v17, %v1514_v9  ;;  %v1685_v49 = vmul.f32 %v3701_v36, %v3701_v36  ;;  %v1637_v55 = vadd.f32 %v3698_v25, %v3704_v14 }
 0x3be   :  { %v1324_v58 = vpop.f32.mrf.mxu1 }
 0x3bf   :  { %v1518_v42 = vadd.f32 %v1517_v0, %v1324_v58  ;;  %v3714_v47 = vadd.f32 %v3683_v15, %v1516_v26  ;;  %v1686_v44 = vmul.f32 %v3711_v43, %v3711_v43  ;;  %v1625_v0 = vadd.f32 %v1624_v29, %v3701_v36 }
 0x3c0   :  { %v1328_v38 = vpop.f32.mrf.mxu1  ;;  %v1714_v62 = vadd.f32 %v1713_v41, %v1685_v49  ;;  %v1638_v54 = vadd.f32 %v1637_v55, %v3711_v43 }
 0x3c1   :  { %v1522_v13 = vadd.f32 %v1521_v32, %v1328_v38  ;;  %v3723_v59 = vadd.f32 %v3687_v17, %v1518_v42  ;;  %v1687_v28 = vmul.f32 %v3714_v47, %v3714_v47  ;;  %v1626_v57 = vadd.f32 %v1625_v0, %v3714_v47 }
 0x3c2   :  { %v1330_v40 = vpop.f32.mrf.mxu1 }
 0x3c3   :  { %v3726_v2 = vadd.f32 %v3683_v15, %v1522_v13  ;;  %v1524_v7 = vadd.f32 %v1523_v34, %v1330_v40  ;;  %v1688_v63 = vmul.f32 %v3723_v59, %v3723_v59  ;;  %v1715_v48 = vadd.f32 %v1714_v62, %v1687_v28 }
 0x3c4   :  { %v1332_v12 = vpop.f32.mrf.mxu1  ;;  %v1639_v10 = vadd.f32 %v1638_v54, %v3723_v59 }
 0x3c5   :  { %v1526_v16 = vadd.f32 %v1525_v6, %v1332_v12  ;;  %v3739_v33 = vadd.f32 %v3687_v17, %v1524_v7  ;;  %v1726_v6 = vadd.f32 %v1684_v30, %v1682_v24  ;;  %v1689_v56 = vmul.f32 %v3726_v2, %v3726_v2 }
 0x3c6   :  { %v1334_v52 = vpop.f32.mrf.mxu1  ;;  %v1627_v27 = vadd.f32 %v1626_v57, %v3726_v2 }
 0x3c7   :  { %v3745_v32 = vadd.f32 %v3683_v15, %v1526_v16  ;;  %v1528_v34 = vadd.f32 %v1527_v39, %v1334_v52  ;;  %v1727_v39 = vadd.f32 %v1726_v6, %v1686_v44  ;;  %v1690_v53 = vmul.f32 %v3739_v33, %v3739_v33  ;;  %v3796_v6 = vpop.f32.mrf.mxu0 }
 0x3c8   :  { %v1338_v60 = vpop.f32.mrf.mxu1  ;;  %v1640_v38 = vadd.f32 %v1639_v10, %v3739_v33 }
 0x3c9   :  { %v3754_v51 = vadd.f32 %v3687_v17, %v1528_v34  ;;  %v1532_v61 = vadd.f32 %v3664_v23, %v1338_v60  ;;  %v1691_v8 = vmul.f32 %v3745_v32, %v3745_v32  ;;  %v1728_v9 = vadd.f32 %v1727_v39, %v1688_v63 }
 0x3ca   :  { %v1340_v19 = vpop.f32.mrf.mxu1  ;;  %v1716_v23 = vadd.f32 %v1715_v48, %v1689_v56  ;;  %v1628_v13 = vadd.f32 %v1627_v27, %v3745_v32 }
 0x3cb   :  { %v3766_v46 = vadd.f32 %v3683_v15, %v1532_v61  ;;  %v1692_v26 = vmul.f32 %v3754_v51, %v3754_v51  ;;  %v1534_v58 = vadd.f32 %v3666_v35, %v1340_v19  ;;  %v1729_v30 = vadd.f32 %v1728_v9, %v1690_v53  ;;  %v3802_v19 = vpop.f32.mrf.mxu0 }
 0x3cc   :  { %v1342_v42 = vpop.f32.mrf.mxu1  ;;  %v1717_v49 = vadd.f32 %v1716_v23, %v1691_v8  ;;  %v1641_v35 = vadd.f32 %v1640_v38, %v3754_v51 }
 0x3cd   :  { %v1693_v45 = vmul.f32 %v3766_v46, %v3766_v46  ;;  %v1536_v40 = vadd.f32 %v3668_v20, %v1342_v42  ;;  %v3779_v7 = vadd.f32 %v3687_v17, %v1534_v58  ;;  %v1629_v24 = vadd.f32 %v1628_v13, %v3766_v46 }
 0x3ce   :  { %v1344_v12 = vpop.f32.mrf.mxu1  ;;  %v1730_v41 = vadd.f32 %v1729_v30, %v1692_v26 }
 0x3cf   :  { %v3784_v29 = vadd.f32 %v3683_v15, %v1536_v40  ;;  %v1538_v16 = vadd.f32 %v3670_v31, %v1344_v12  ;;  %v1718_v44 = vadd.f32 %v1717_v49, %v1693_v45  ;;  %v1694_v20 = vmul.f32 %v3779_v7, %v3779_v7  ;;  %v1565_v12 = vpop.f32.mrf.mxu0 }
 0x3d0   :  { %v1348_v28 = vpop.f32.mrf.mxu1  ;;  %v1642_v52 = vadd.f32 %v1641_v35, %v3779_v7 }
 0x3d1   :  { %v1630_v55 = vadd.f32 %v1629_v24, %v3784_v29  ;;  %v1695_v0 = vmul.f32 %v3784_v29, %v3784_v29  ;;  %v3794_v34 = vadd.f32 %v3687_v17, %v1538_v16  ;;  %v1731_v62 = vadd.f32 %v1730_v41, %v1694_v20 }
 0x3d2   :  { %v1350_v31 = vpop.f32.mrf.mxu1  ;;  %v1542_v57 = vadd.f32 %v3672_v4, %v1348_v28 }
 0x3d3   :  { %v1631_v63 = vrot.slane %v1630_v55, 4  ;;  %v1719_v56 = vadd.f32 %v1718_v44, %v1695_v0  ;;  %v1643_v60 = vadd.f32 %v1642_v52, %v3794_v34  ;;  %v1696_v54 = vmul.f32 %v3794_v34, %v3794_v34 }
 0x3d4   :  { %v1352_v61 = vpop.f32.mrf.mxu1  ;;  %v1544_v10 = vadd.f32 %v3674_v18, %v1350_v31  ;;  %v3807_v38 = vadd.f32 %v3683_v15, %v1542_v57 }
 0x3d5   :  { %v1632_v39 = vadd.f32 %v1631_v63, %v1630_v55  ;;  %v1720_v48 = vrot.slane %v1719_v56, 4  ;;  %v1644_v53 = vrot.slane %v1643_v60, 4  ;;  %v1732_v8 = vadd.f32 %v1731_v62, %v1696_v54 }
 0x3d6   :  { %v1546_v27 = vadd.f32 %v3679_v50, %v1352_v61  ;;  %v1354_v9 = vpop.f32.mrf.mxu1  ;;  %v3814_v50 = vadd.f32 %v3687_v17, %v1544_v10 }
 0x3d7   :  { %v1633_v23 = vrot.slane %v1632_v39, 2  ;;  %v1721_v26 = vadd.f32 %v1720_v48, %v1719_v56  ;;  %v1645_v58 = vadd.f32 %v1644_v53, %v1643_v60  ;;  %v1733_v42 = vrot.slane %v1732_v8, 4 }
 0x3d8   :  { %v3810_v4 = vadd.f32 %v3683_v15, %v1546_v27  ;;  %v1548_v13 = vadd.f32 %v3689_v5, %v1354_v9  ;;  %v1358_v45 = vpop.f32.mrf.mxu1  ;;  %v1697_v5 = vmul.f32 %v3807_v38, %v3807_v38  ;;  %v1698_v60 = vmul.f32 %v3814_v50, %v3814_v50 }
 0x3d9   :  { %v1634_v40 = vadd.f32 %v1633_v23, %v1632_v39  ;;  %v1722_v30 = vrot.slane %v1721_v26, 2  ;;  %v1646_v49 = vrot.slane %v1645_v58, 2  ;;  %v1734_v18 = vadd.f32 %v1733_v42, %v1732_v8 }
 0x3da   :  { %v3817_v35 = vadd.f32 %v3687_v17, %v1548_v13  ;;  %v1552_v24 = vadd.f32 %v3706_v22, %v1358_v45  ;;  %v1360_v16 = vpop.f32.mrf.mxu1  ;;  %v1699_v52 = vmul.f32 %v3810_v4, %v3810_v4  ;;  %v1567_v22 = vpop.f32.mrf.mxu0  ;;  %v1650_v54 = vadd.f32 %v3810_v4, %v3807_v38 }
 0x3db   :  { %v1635_v41 = vrot.slane %v1634_v40, 1  ;;  %v1723_v44 = vadd.f32 %v1722_v30, %v1721_v26  ;;  %v1647_v20 = vadd.f32 %v1646_v49, %v1645_v58  ;;  %v1735_v28 = vrot.slane %v1734_v18, 2 }
 0x3dc   :  { %v3825_v55 = vadd.f32 %v3683_v15, %v1552_v24  ;;  %v1362_v0 = vpop.f32.mrf.mxu1  ;;  %v1700_v57 = vmul.f32 %v3817_v35, %v3817_v35  ;;  %v1554_v61 = vadd.f32 %v3732_v11, %v1360_v16  ;;  %v1739_v45 = vadd.f32 %v1699_v52, %v1697_v5 }
 0x3dd   :  { %v1636_v62 = vadd.f32 %v1635_v41, %v1634_v40  ;;  %v1724_v31 = vrot.slane %v1723_v44, 1  ;;  %v1648_v63 = vrot.slane %v1647_v20, 1  ;;  %v1736_v56 = vadd.f32 %v1735_v28, %v1734_v18  ;;  %v1571_v40 = vpop.f32.mrf.mxu0 }
 0x3de   :  { %v1364_v39 = vpop.f32.mrf.mxu1  ;;  %v1701_v27 = vmul.f32 %v3825_v55, %v3825_v55  ;;  %v3839_v9 = vadd.f32 %v3687_v17, %v1554_v61  ;;  %v1556_v23 = vadd.f32 %v3757_v1, %v1362_v0  ;;  %v1663_v49 = vadd.f32 %v3817_v35, %v3814_v50 }
 0x3df   :  { %v3834_v48 = vmul.f32 0.015625, %v1636_v62  ;;  %v1725_v53 = vadd.f32 %v1724_v31, %v1723_v44  ;;  %v1649_v8 = vadd.f32 %v1648_v63, %v1647_v20  ;;  %v1737_v10 = vrot.slane %v1736_v56, 1  ;;  %v1573_v61 = vpop.f32.mrf.mxu0 }
 0x3e0   :  { %v1558_v26 = vadd.f32 %v3776_v37, %v1364_v39  ;;  %v1368_v58 = vpop.f32.mrf.mxu1  ;;  %v1702_v18 = vmul.f32 %v3839_v9, %v3839_v9  ;;  %v3852_v1 = vadd.f32 %v3683_v15, %v1556_v23  ;;  %v1752_v41 = vadd.f32 %v1700_v57, %v1698_v60 }
 0x3e1   :  { %v1765_v42 = vmul.f32 0.015625, %v1725_v53  ;;  %v1769_v11 = vmul.f32 %v3834_v48, %v3834_v48  ;;  %v3845_v13 = vmul.f32 0.015625, %v1649_v8  ;;  %v1738_v30 = vadd.f32 %v1737_v10, %v1736_v56 }
 0x3e2   :  { %v1370_v37 = vpop.f32.mrf.mxu1  ;;  %v3857_v44 = vadd.f32 %v3687_v17, %v1558_v26  ;;  %v1651_v5 = vadd.f32 %v1650_v54, %v3825_v55  ;;  %v1740_v52 = vadd.f32 %v1739_v45, %v1701_v27  ;;  %v1664_v31 = vadd.f32 %v1663_v49, %v3839_v9 }
 0x3e3   :  { %v1773_v24 = vsub.f32 %v1765_v42, %v1769_v11  ;;  %v1770_v16 = vmul.f32 %v3845_v13, %v3845_v13  ;;  %v1766_v28 = vmul.f32 0.015625, %v1738_v30  ;;  %v1753_v63 = vadd.f32 %v1752_v41, %v1702_v18 }
 0x3e4   :  { %v1372_v0 = vpop.f32.mrf.mxu1  ;;  %v1562_v56 = vadd.f32 %v3796_v6, %v1368_v58  ;;  %v1703_v60 = vmul.f32 %v3852_v1, %v3852_v1  ;;  %v1564_v57 = vadd.f32 %v3802_v19, %v1370_v37  ;;  %v1704_v54 = vmul.f32 %v3857_v44, %v3857_v44 }
 0x3e5   :  { %v1777_v62 = vmax.f32 %v1773_v24, 0.0  ;;  %v1774_v39 = vsub.f32 %v1766_v28, %v1770_v16  ;;  %v1566_v53 = vadd.f32 %v1565_v12, %v1372_v0  ;;  %v1652_v6 = vadd.f32 %v1651_v5, %v3852_v1 }
 0x3e6   :  { %v1374_v8 = vpop.f32.mrf.mxu1  ;;  %v3870_v27 = vadd.f32 %v3683_v15, %v1562_v56  ;;  %v3874_v58 = vadd.f32 %v3687_v17, %v1564_v57  ;;  %v1665_v12 = vadd.f32 %v1664_v31, %v3857_v44  ;;  %v1741_v49 = vadd.f32 %v1740_v52, %v1703_v60 }
 0x3e7   :  { %v1813_v10 = vadd.f32 1e-05, %v1777_v62  ;;  %v1568_v23 = vadd.f32 %v1567_v22, %v1374_v8  ;;  %v1778_v26 = vmax.f32 %v1774_v39, 0.0  ;;  %v3877_v42 = vadd.f32 %v3683_v15, %v1566_v53  ;;  %v1575_v22 = vpop.f32.mrf.mxu0 }
 0x3e8   :  { %v1378_v19 = vpop.f32.mrf.mxu1  ;;  %v1705_v11 = vmul.f32 %v3870_v27, %v3870_v27  ;;  %v1706_v18 = vmul.f32 %v3874_v58, %v3874_v58  ;;  %v1754_v16 = vadd.f32 %v1753_v63, %v1704_v54  ;;  %v1653_v41 = vadd.f32 %v1652_v6, %v3870_v27 }
 0x3e9   :  { %2829 = vrsqrt.f32 %v1813_v10  ;;  %v3883_v45 = vadd.f32 %v3687_v17, %v1568_v23  ;;  %v1814_v30 = vadd.f32 1e-05, %v1778_v26  ;;  %v1707_v37 = vmul.f32 %v3877_v42, %v3877_v42  ;;  %v1577_v57 = vpop.f32.mrf.mxu0 }
 0x3ea   :  { %v1380_v24 = vpop.f32.mrf.mxu1  ;;  %v1666_v28 = vadd.f32 %v1665_v12, %v3874_v58  ;;  %v1572_v5 = vadd.f32 %v1571_v40, %v1378_v19  ;;  %v1742_v0 = vadd.f32 %v1741_v49, %v1705_v11  ;;  %v1796_v56 = vsub.f32 %v3794_v34, %v3845_v13 }
 0x3eb   :  { %2831 = vrsqrt.f32 %v1814_v30  ;;  %v1708_v62 = vmul.f32 %v3883_v45, %v3883_v45  ;;  %v1574_v31 = vadd.f32 %v1573_v61, %v1380_v24  ;;  %v1654_v39 = vadd.f32 %v1653_v41, %v3877_v42 }
 0x3ec   :  { %v1382_v52 = vpop.f32.mrf.mxu1  ;;  %v3897_v60 = vadd.f32 %v3683_v15, %v1572_v5  ;;  %v1755_v53 = vadd.f32 %v1754_v16, %v1706_v18  ;;  %v1743_v8 = vadd.f32 %v1742_v0, %v1707_v37  ;;  %v1667_v40 = vadd.f32 %v1666_v28, %v3883_v45 }
 0x3ed   :  { %v1576_v63 = vadd.f32 %v1575_v22, %v1382_v52  ;;  %v3901_v10 = vadd.f32 %v3687_v17, %v1574_v31  ;;  %v1782_v22 = vsub.f32 %v3704_v14, %v3845_v13  ;;  %v1784_v24 = vsub.f32 %v3698_v25, %v3845_v13 }
 0x3ee   :  { %v1384_v54 = vpop.f32.mrf.mxu1  ;;  %v1655_v61 = vadd.f32 %v1654_v39, %v3897_v60  ;;  %v1709_v23 = vmul.f32 %v3897_v60, %v3897_v60  ;;  %v1756_v19 = vadd.f32 %v1755_v53, %v1708_v62  ;;  %v1790_v16 = vsub.f32 %v3739_v33, %v3845_v13 }
 0x3ef   :  { %v3907_v26 = vadd.f32 %v3683_v15, %v1576_v63  ;;  %v1578_v6 = vadd.f32 %v1577_v57, %v1384_v54  ;;  %v1668_v12 = vadd.f32 %v1667_v40, %v3901_v10  ;;  %v1710_v11 = vmul.f32 %v3901_v10, %v3901_v10 }
 0x3f0   :  { %v1744_v30 = vadd.f32 %v1743_v8, %v1709_v23  ;;  %v1792_v41 = vsub.f32 %v3754_v51, %v3845_v13  ;;  %v1783_v62 = vsub.f32 %v3692_v3, %v3834_v48  ;;  %v1789_v25 = vsub.f32 %v3726_v2, %v3834_v48 }
 0x3f1   :  { %v1656_v49 = vadd.f32 %v1655_v61, %v3907_v26  ;;  %v1711_v18 = vmul.f32 %v3907_v26, %v3907_v26  ;;  %v3918_v37 = vadd.f32 %v3687_v17, %v1578_v6  ;;  %v1757_v15 = vadd.f32 %v1756_v19, %v1710_v11 }
 0x3f2   :  { %v1781_v17 = vsub.f32 %v3695_v21, %v3834_v48  ;;  %v1791_v33 = vsub.f32 %v3745_v32, %v3834_v48  ;;  %v1786_v57 = vsub.f32 %v3711_v43, %v3845_v13  ;;  %v1788_v21 = vsub.f32 %v3723_v59, %v3845_v13 }
 0x3f3   :  { %v1657_v14 = vrot.slane %v1656_v49, 4  ;;  %v1745_v28 = vadd.f32 %v1744_v30, %v1711_v18  ;;  %v1669_v5 = vadd.f32 %v1668_v12, %v3918_v37  ;;  %v1712_v0 = vmul.f32 %v3918_v37, %v3918_v37 }
 0x3f4   :  { %v1794_v3 = vsub.f32 %v3779_v7, %v3845_v13  ;;  %v1785_v2 = vsub.f32 %v3701_v36, %v3834_v48 }
 0x3f5   :  { %v1658_v51 = vadd.f32 %v1657_v14, %v1656_v49  ;;  %v1746_v31 = vrot.slane %v1745_v28, 4  ;;  %v1670_v52 = vrot.slane %v1669_v5, 4  ;;  %v1758_v39 = vadd.f32 %v1757_v15, %v1712_v0 }
 0x3f6   :  { %v3937_v63 = vpop.eup %2829 }
 0x3f7   :  { %v1659_v53 = vrot.slane %v1658_v51, 2  ;;  %v1747_v32 = vadd.f32 %v1746_v31, %v1745_v28  ;;  %v1671_v8 = vadd.f32 %v1670_v52, %v1669_v5  ;;  %v1759_v40 = vrot.slane %v1758_v39, 4 }
 0x3f8   :  { %v1821_v54 = vmul.f32 %v3937_v63, %v1781_v17  ;;  %v1823_v61 = vmul.f32 %v3937_v63, %v1783_v62  ;;  %v1829_v23 = vmul.f32 %v3937_v63, %v1789_v25  ;;  %v1831_v43 = vmul.f32 %v3937_v63, %v1791_v33  ;;  %v2832_v6 = vpop.eup %2831 }
 0x3f9   :  { %v1660_v59 = vadd.f32 %v1659_v53, %v1658_v51  ;;  %v1748_v19 = vrot.slane %v1747_v32, 2  ;;  %v1672_v12 = vrot.slane %v1671_v8, 2  ;;  %v1760_v7 = vadd.f32 %v1759_v40, %v1758_v39 }
 0x3fa   :  { %v1822_v11 = vmul.f32 %v2832_v6, %v1782_v22  ;;  %v1824_v30 = vmul.f32 %v2832_v6, %v1784_v24  ;;  %v1830_v36 = vmul.f32 %v2832_v6, %v1790_v16  ;;  %v1832_v49 = vmul.f32 %v2832_v6, %v1792_v41 }
 0x3fb   :  { %v1661_v18 = vrot.slane %v1660_v59, 1  ;;  %v1749_v15 = vadd.f32 %v1748_v19, %v1747_v32  ;;  %v1673_v14 = vadd.f32 %v1672_v12, %v1671_v8  ;;  %v1761_v28 = vrot.slane %v1760_v7, 2 }
 0x3fc   :  { %v1854_v5 = vmax.f32 %v1822_v11, 0.0  ;;  %v1856_v0 = vmax.f32 %v1824_v30, 0.0  ;;  %v1862_v17 = vmax.f32 %v1830_v36, 0.0  ;;  %v1864_v62 = vmax.f32 %v1832_v49, 0.0 }
 0x3fd   :  { %v1662_v25 = vadd.f32 %v1661_v18, %v1660_v59  ;;  %v1750_v31 = vrot.slane %v1749_v15, 1  ;;  %v1674_v33 = vrot.slane %v1673_v14, 1  ;;  %v1762_v52 = vadd.f32 %v1761_v28, %v1760_v7 }
 0x3fe   :  { %v1886_v51 = vpack.c.bf16 %v1856_v0, %v1854_v5  ;;  %v1890_v53 = vpack.c.bf16 %v1864_v62, %v1862_v17  ;;  %v1853_v20 = vmax.f32 %v1821_v54, 0.0  ;;  %v1855_v39 = vmax.f32 %v1823_v61, 0.0 }
 0x3ff   :  { %v3951_v22 = vmul.f32 0.015625, %v1662_v25  ;;  %v1751_v24 = vadd.f32 %v1750_v31, %v1749_v15  ;;  %v1675_v16 = vadd.f32 %v1674_v33, %v1673_v14  ;;  %v1763_v41 = vrot.slane %v1762_v52, 1 }
 0x400   :  { %2068 = vmatprep.mubr.bf16.mxu0 %v1886_v51  ;;  %2084 = vmatprep.mubr.bf16.mxu1 %v1890_v53  ;;  %v1885_v32 = vpack.c.bf16 %v1855_v39, %v1853_v20  ;;  %v1861_v8 = vmax.f32 %v1829_v23, 0.0  ;;  %v1863_v40 = vmax.f32 %v1831_v43, 0.0  ;;  %v1826_v19 = vmul.f32 %v2832_v6, %v1786_v57 }
 0x401   :  { %v1767_v12 = vmul.f32 0.015625, %v1751_v24  ;;  %v1771_v59 = vmul.f32 %v3951_v22, %v3951_v22  ;;  %v3955_v7 = vmul.f32 0.015625, %v1675_v16  ;;  %v1787_v54 = vsub.f32 %v3714_v47, %v3834_v48 }
 0x402   :  { %v1764_v61 = vadd.f32 %v1763_v41, %v1762_v52  ;;  %2069 = vmatmul.mubr.bf16.vlgmr.msra.gmra.mxu0 %v1885_v32  ;;  %v1889_v11 = vpack.c.bf16 %v1863_v40, %v1861_v8  ;;  %v1828_v30 = vmul.f32 %v2832_v6, %v1788_v21  ;;  %v1858_v36 = vmax.f32 %v1826_v19, 0.0 }
 0x403   :  { %v1775_v49 = vsub.f32 %v1767_v12, %v1771_v59  ;;  %v1772_v20 = vmul.f32 %v3955_v7, %v3955_v7  ;;  %v1834_v23 = vmul.f32 %v2832_v6, %v1794_v3  ;;  %v1793_v57 = vsub.f32 %v3766_v46, %v3834_v48 }
 0x404   :  { %v1768_v43 = vmul.f32 0.015625, %v1764_v61  ;;  %2085 = vmatmul.mubr.bf16.vlgmr.msra.gmra.mxu1 %v1889_v11  ;;  %v1860_v18 = vmax.f32 %v1828_v30, 0.0  ;;  %v1836_v47 = vmul.f32 %v2832_v6, %v1796_v56  ;;  %v1825_v15 = vmul.f32 %v3937_v63, %v1785_v2 }
 0x405   :  { %v1779_v14 = vmax.f32 %v1775_v49, 0.0  ;;  %v1866_v21 = vmax.f32 %v1834_v23, 0.0  ;;  %v1827_v28 = vmul.f32 %v3937_v63, %v1787_v54  ;;  %v1833_v5 = vmul.f32 %v3937_v63, %v1793_v57 }
 0x406   :  { %v1776_v0 = vsub.f32 %v1768_v43, %v1772_v20  ;;  %v1888_v3 = vpack.c.bf16 %v1860_v18, %v1858_v36  ;;  %v1868_v17 = vmax.f32 %v1836_v47, 0.0  ;;  %v1857_v62 = vmax.f32 %v1825_v15, 0.0 }
 0x407   :  { %v1815_v46 = vadd.f32 1e-05, %v1779_v14  ;;  %v1859_v25 = vmax.f32 %v1827_v28, 0.0  ;;  %v4212_v31 = vsub.f32 %v3784_v29, %v3834_v48  ;;  %v1865_v13 = vmax.f32 %v1833_v5, 0.0 }
 0x408   :  { %v1780_v56 = vmax.f32 %v1776_v0, 0.0  ;;  %2076 = vmatprep.mubr.bf16.mxu0 %v1888_v3  ;;  %v1892_v2 = vpack.c.bf16 %v1868_v17, %v1866_v21  ;;  %v1797_v53 = vsub.f32 %v3807_v38, %v3951_v22  ;;  %v1799_v29 = vsub.f32 %v3810_v4, %v3951_v22 }
 0x409   :  { %v1835_v34 = vmul.f32 %v3937_v63, %v4212_v31  ;;  %2833 = vrsqrt.f32 %v1815_v46  ;;  %v1887_v6 = vpack.c.bf16 %v1859_v25, %v1857_v62  ;;  %v1798_v24 = vsub.f32 %v3814_v50, %v3955_v7 }
 0x40a   :  { %v1816_v52 = vadd.f32 1e-05, %v1780_v56  ;;  %2092 = vmatprep.mubr.bf16.mxu1 %v1892_v2  ;;  %v1800_v16 = vsub.f32 %v3817_v35, %v3955_v7  ;;  %v1802_v41 = vsub.f32 %v3839_v9, %v3955_v7  ;;  %v1804_v32 = vsub.f32 %v3857_v44, %v3955_v7 }
 0x40b   :  { %v1867_v33 = vmax.f32 %v1835_v34, 0.0  ;;  %2077 = vmatmul.mubr.bf16.gmra.mxu0 %v1887_v6  ;;  %v1801_v35 = vsub.f32 %v3825_v55, %v3951_v22  ;;  %v1803_v9 = vsub.f32 %v3852_v1, %v3951_v22  ;;  %v1806_v44 = vsub.f32 %v3874_v58, %v3955_v7 }
 0x40c   :  { %2835 = vrsqrt.f32 %v1816_v52  ;;  %v1808_v36 = vsub.f32 %v3883_v45, %v3955_v7  ;;  %v1805_v14 = vsub.f32 %v3870_v27, %v3951_v22  ;;  %v1807_v58 = vsub.f32 %v3877_v42, %v3951_v22 }
 0x40d   :  { %v1891_v51 = vpack.c.bf16 %v1867_v33, %v1865_v13  ;;  %v1812_v45 = vsub.f32 %v3918_v37, %v3955_v7  ;;  %v1810_v21 = vsub.f32 %v3901_v10, %v3955_v7  ;;  %v1811_v42 = vsub.f32 %v3907_v26, %v3951_v22 }
 0x40e   :  { %v1809_v37 = vsub.f32 %v3897_v60, %v3951_v22  ;;  %v4008_v22 = vld [vmem:[%s4169_s10] ss:$0 sm:$0xff]  ;;  %s3063_s10 = smov [#allocation14]  }
 0x40f   :  { %2093 = vmatmul.mubr.bf16.gmra.mxu1 %v1891_v51  ;;  %s2348_s24 = sshll.u32 %s3063_s10, 4  ;;  %s4140_s24 = int_to_ptr.vmem [resolvable:$true] %s2348_s24 }
 0x410   :  { %s2997_s29 = scalar_lea.vmem %s4140_s24, 2048  ;;  %p3002_p8 = scmp.lt.s32.totalorder %s4140_s24, %s4140_s24 }
 0x411   :  { %p2998_p7 = scmp.ne.s32.totalorder %s4140_s24, %s2997_s29  ;;  %p3003_p9 = scmp.lt.s32.totalorder %s2997_s29, %s2997_s29 }
 0x413   :  { %p3004_p10 = por %p3003_p9, %p3002_p8 }
 0x415   :  { %p3005_p11 = pnand %p3004_p10, %p2998_p7 }
 0x416   :  { %v2834_v48 = vpop.eup %2833 }
 0x417   :  { %v1837_v63 = vmul.f32 %v2834_v48, %v1797_v53  ;;  %v1839_v39 = vmul.f32 %v2834_v48, %v1799_v29  ;;  %v1841_v20 = vmul.f32 %v2834_v48, %v1801_v35  ;;  %v1843_v23 = vmul.f32 %v2834_v48, %v1803_v9 }
 0x418   :  { %v1845_v5 = vmul.f32 %v2834_v48, %v1805_v14  ;;  %v1847_v0 = vmul.f32 %v2834_v48, %v1807_v58  ;;  %v1849_v10 = vmul.f32 %v2834_v48, %v1809_v37  ;;  %v1851_v7 = vmul.f32 %v2834_v48, %v1811_v42 }
 0x419   :  { %v2836_v8 = vpop.eup %2835  ;;  %v1869_v12 = vmax.f32 %v1837_v63, 0.0  ;;  %v1871_v59 = vmax.f32 %v1839_v39, 0.0  ;;  %v1873_v55 = vmax.f32 %v1841_v20, 0.0  ;;  %v1875_v47 = vmax.f32 %v1843_v23, 0.0 }
 0x41a   :  { %v1838_v38 = vmul.f32 %v2836_v8, %v1798_v24  ;;  %v1840_v40 = vmul.f32 %v2836_v8, %v1800_v16  ;;  %v1842_v19 = vmul.f32 %v2836_v8, %v1802_v41  ;;  %v1844_v4 = vmul.f32 %v2836_v8, %v1804_v32 }
 0x41b   :  { %v1893_v49 = vpack.c.bf16 %v1871_v59, %v1869_v12  ;;  %v1846_v43 = vmul.f32 %v2836_v8, %v1806_v44  ;;  %v1848_v18 = vmul.f32 %v2836_v8, %v1808_v36  ;;  %v1895_v28 = vpack.c.bf16 %v1875_v47, %v1873_v55 }
 0x41c   :  { %v1870_v54 = vmax.f32 %v1838_v38, 0.0  ;;  %v1872_v61 = vmax.f32 %v1840_v40, 0.0  ;;  %v1874_v11 = vmax.f32 %v1842_v19, 0.0  ;;  %v1876_v50 = vmax.f32 %v1844_v4, 0.0 }
 0x41d   :  { %v1878_v15 = vmax.f32 %v1846_v43, 0.0  ;;  %v1880_v1 = vmax.f32 %v1848_v18, 0.0  ;;  %v1850_v17 = vmul.f32 %v2836_v8, %v1810_v21  ;;  %v1852_v62 = vmul.f32 %v2836_v8, %v1812_v45 }
 0x41e   :  { %v1894_v30 = vpack.c.bf16 %v1872_v61, %v1870_v54  ;;  %v1896_v57 = vpack.c.bf16 %v1876_v50, %v1874_v11  ;;  %v1877_v46 = vmax.f32 %v1845_v5, 0.0  ;;  %v1879_v25 = vmax.f32 %v1847_v0, 0.0 }
 0x41f   :  { %v1898_v3 = vpack.c.bf16 %v1880_v1, %v1878_v15  ;;  %v1882_v27 = vmax.f32 %v1850_v17, 0.0  ;;  %v1884_v31 = vmax.f32 %v1852_v62, 0.0  ;;  %v1881_v56 = vmax.f32 %v1849_v10, 0.0 }
 0x420   :  { %2100 = vmatprep.mubr.bf16.mxu1 %v1894_v30  ;;  %v1897_v34 = vpack.c.bf16 %v1879_v25, %v1877_v46  ;;  %v1883_v2 = vmax.f32 %v1851_v7, 0.0 }
 0x421   :  { %2101 = vmatmul.mubr.bf16.gmra.mxu1 %v1893_v49  ;;  %v1900_v13 = vpack.c.bf16 %v1884_v31, %v1882_v27 }
 0x422   :  { %2108 = vmatprep.mubr.bf16.mxu1 %v1896_v57  ;;  %v1899_v6 = vpack.c.bf16 %v1883_v2, %v1881_v56 }
 0x429   :  { %2109 = vmatmul.mubr.bf16.gmra.mxu1 %v1895_v28 }
 0x42a   :  { %2116 = vmatprep.mubr.bf16.mxu1 %v1898_v3 }
 0x431   :  { %2117 = vmatmul.mubr.bf16.gmra.mxu1 %v1897_v34 }
 0x432   :  { %2124 = vmatprep.mubr.bf16.mxu1 %v1900_v13 }
 0x439   :  { %2125 = vmatmul.mubr.bf16.gmra.mxu1 %v1899_v6 }
 0x4c2   :  { %v2501_v33 = vpop.f32.mrf.mxu0 }
 0x4c4   :  { %v2513_v52 = vpop.f32.mrf.mxu1  ;;  %v2502_v51 = vpop.f32.mrf.mxu0 }
 0x4c5   :  { %v2503_v24 = vadd.f32 %v2502_v51, %v2501_v33 }
 0x4c6   :  { %v2514_v53 = vpop.f32.mrf.mxu1  ;;  %v2504_v29 = vpop.f32.mrf.mxu0 }
 0x4c7   :  { %v4014_v8 = vadd.f32 %v2503_v24, %v4008_v22  ;;  %v2515_v40 = vadd.f32 %v2514_v53, %v2513_v52 }
 0x4c8   :  { %v2516_v63 = vpop.f32.mrf.mxu1  ;;  %v2505_v26 = vpop.f32.mrf.mxu0 }
 0x4c9   :  { %v2506_v39 = vadd.f32 %v2505_v26, %v2504_v29  ;;  %v2161_v50 = vmul.f32 %v4014_v8, %v4014_v8  ;;  %v4028_v44 = vadd.f32 %v2515_v40, %v4008_v22 }
 0x4ca   :  { %v2517_v60 = vpop.f32.mrf.mxu1 }
 0x4cb   :  { %v2507_v48 = vpop.f32.mrf.mxu0  ;;  %v4011_v16 = vadd.f32 %v2506_v39, %v4008_v22  ;;  %v2518_v54 = vadd.f32 %v2517_v60, %v2516_v63  ;;  %v2165_v1 = vmul.f32 %v4028_v44, %v4028_v44 }
 0x4cd   :  { %v2508_v32 = vpop.f32.mrf.mxu0  ;;  %v2162_v12 = vmul.f32 %v4011_v16, %v4011_v16  ;;  %v2133_v35 = vadd.f32 %v4011_v16, %v4014_v8  ;;  %v4035_v43 = vadd.f32 %v2518_v54, %v4008_v22 }
 0x4ce   :  { %v2509_v38 = vadd.f32 %v2508_v32, %v2507_v48 }
 0x4cf   :  { %v2519_v41 = vpop.f32.mrf.mxu1  ;;  %v2510_v4 = vpop.f32.mrf.mxu0  ;;  %v2177_v49 = vadd.f32 %v2162_v12, %v2161_v50  ;;  %v2166_v21 = vmul.f32 %v4035_v43, %v4035_v43 }
 0x4d0   :  { %v4019_v59 = vadd.f32 %v2509_v38, %v4008_v22 }
 0x4d1   :  { %v2520_v19 = vpop.f32.mrf.mxu1  ;;  %v2511_v11 = vpop.f32.mrf.mxu0 }
 0x4d2   :  { %v2163_v9 = vmul.f32 %v4019_v59, %v4019_v59  ;;  %v2512_v30 = vadd.f32 %v2511_v11, %v2510_v4  ;;  %v2134_v20 = vadd.f32 %v2133_v35, %v4019_v59  ;;  %v2521_v23 = vadd.f32 %v2520_v19, %v2519_v41 }
 0x4d3   :  { %v2522_v61 = vpop.f32.mrf.mxu1 }
 0x4d4   :  { %v4032_v57 = vadd.f32 %v2512_v30, %v4008_v22  ;;  %v2178_v18 = vadd.f32 %v2177_v49, %v2163_v9  ;;  %v4043_v14 = vadd.f32 %v2521_v23, %v4008_v22 }
 0x4d5   :  { %v2523_v36 = vpop.f32.mrf.mxu1 }
 0x4d6   :  { %v2135_v55 = vadd.f32 %v2134_v20, %v4032_v57  ;;  %v2164_v47 = vmul.f32 %v4032_v57, %v4032_v57  ;;  %v2524_v15 = vadd.f32 %v2523_v36, %v2522_v61  ;;  %v2167_v3 = vmul.f32 %v4043_v14, %v4043_v14 }
 0x4d8   :  { %v2136_v58 = vadd.f32 %v2135_v55, %v4028_v44  ;;  %v2179_v45 = vadd.f32 %v2178_v18, %v2164_v47  ;;  %v4049_v5 = vadd.f32 %v2524_v15, %v4008_v22 }
 0x4da   :  { %v2180_v28 = vadd.f32 %v2179_v45, %v2165_v1  ;;  %v2137_v0 = vadd.f32 %v2136_v58, %v4035_v43  ;;  %v2168_v25 = vmul.f32 %v4049_v5, %v4049_v5 }
 0x4dc   :  { %v2138_v17 = vadd.f32 %v2137_v0, %v4043_v14  ;;  %v2181_v62 = vadd.f32 %v2180_v28, %v2166_v21 }
 0x4de   :  { %v2139_v46 = vadd.f32 %v2138_v17, %v4049_v5  ;;  %v2182_v27 = vadd.f32 %v2181_v62, %v2167_v3 }
 0x4e0   :  { %v2140_v31 = vrot.slane %v2139_v46, 4  ;;  %v2183_v42 = vadd.f32 %v2182_v27, %v2168_v25 }
 0x4e1   :  { %v2525_v37 = vpop.f32.mrf.mxu1 }
 0x4e2   :  { %v2141_v34 = vadd.f32 %v2140_v31, %v2139_v46  ;;  %v2184_v10 = vrot.slane %v2183_v42, 4 }
 0x4e3   :  { %v2526_v7 = vpop.f32.mrf.mxu1 }
 0x4e4   :  { %v2142_v13 = vrot.slane %v2141_v34, 2  ;;  %v2185_v56 = vadd.f32 %v2184_v10, %v2183_v42  ;;  %v2527_v4 = vadd.f32 %v2526_v7, %v2525_v37 }
 0x4e5   :  { %v2528_v2 = vpop.f32.mrf.mxu1 }
 0x4e6   :  { %v2143_v6 = vadd.f32 %v2142_v13, %v2141_v34  ;;  %v2186_v33 = vrot.slane %v2185_v56, 2  ;;  %v4066_v30 = vadd.f32 %v2527_v4, %v4008_v22 }
 0x4e7   :  { %v2529_v52 = vpop.f32.mrf.mxu1 }
 0x4e8   :  { %v2144_v51 = vrot.slane %v2143_v6, 1  ;;  %v2187_v53 = vadd.f32 %v2186_v33, %v2185_v56  ;;  %v2530_v38 = vadd.f32 %v2529_v52, %v2528_v2  ;;  %v2169_v15 = vmul.f32 %v4066_v30, %v4066_v30 }
 0x4e9   :  { %v2531_v29 = vpop.f32.mrf.mxu1 }
 0x4ea   :  { %v2145_v63 = vadd.f32 %v2144_v51, %v2143_v6  ;;  %v2188_v26 = vrot.slane %v2187_v53, 1  ;;  %v4063_v11 = vadd.f32 %v2530_v38, %v4008_v22 }
 0x4eb   :  { %v2532_v39 = vpop.f32.mrf.mxu1 }
 0x4ec   :  { %v4058_v24 = vmul.f32 0.015625, %v2145_v63  ;;  %v2189_v60 = vadd.f32 %v2188_v26, %v2187_v53  ;;  %v2533_v12 = vadd.f32 %v2532_v39, %v2531_v29  ;;  %v2170_v23 = vmul.f32 %v4063_v11, %v4063_v11 }
 0x4ed   :  { %v2534_v48 = vpop.f32.mrf.mxu1  ;;  %v2146_v1 = vadd.f32 %v4063_v11, %v4066_v30 }
 0x4ee   :  { %v2203_v41 = vmul.f32 0.015625, %v2189_v60  ;;  %v2205_v32 = vmul.f32 %v4058_v24, %v4058_v24  ;;  %v4069_v36 = vadd.f32 %v2533_v12, %v4008_v22  ;;  %v2190_v28 = vadd.f32 %v2170_v23, %v2169_v15  ;;  %v2841_v23 = vld [vmem:[#allocation2] sm:$0xff] }
 0x4ef   :  { %v2535_v40 = vpop.f32.mrf.mxu1  ;;  %v2211_v56 = vsub.f32 %v4014_v8, %v4058_v24  ;;  %v2212_v2 = vsub.f32 %v4011_v16, %v4058_v24  ;;  %v2213_v33 = vsub.f32 %v4019_v59, %v4058_v24  ;;  %v2214_v52 = vsub.f32 %v4032_v57, %v4058_v24 }
 0x4f0   :  { %v2207_v19 = vsub.f32 %v2203_v41, %v2205_v32  ;;  %v2536_v50 = vadd.f32 %v2535_v40, %v2534_v48  ;;  %v2171_v58 = vmul.f32 %v4069_v36, %v4069_v36  ;;  %v2147_v0 = vadd.f32 %v2146_v1, %v4069_v36  ;;  %v2843_v1 = vld [vmem:[#allocation2 + $0x10] sm:$0xff] }
 0x4f1   :  { %v2537_v54 = vpop.f32.mrf.mxu1  ;;  %v2215_v29 = vsub.f32 %v4028_v44, %v4058_v24  ;;  %v2216_v63 = vsub.f32 %v4035_v43, %v4058_v24  ;;  %v2217_v8 = vsub.f32 %v4043_v14, %v4058_v24  ;;  %v2218_v16 = vsub.f32 %v4049_v5, %v4058_v24  ;;  %v2295_v24 = vld [vmem:[#allocation5] sm:$0xff] }
 0x4f2   :  { %v2209_v61 = vmax.f32 %v2207_v19, 0.0  ;;  %v4074_v18 = vadd.f32 %v2536_v50, %v4008_v22  ;;  %v2191_v25 = vadd.f32 %v2190_v28, %v2171_v58 }
 0x4f3   :  { %v2538_v35 = vpop.f32.mrf.mxu1 }
 0x4f4   :  { %v2227_v9 = vadd.f32 1e-05, %v2209_v61  ;;  %v2539_v49 = vadd.f32 %v2538_v35, %v2537_v54  ;;  %v2172_v3 = vmul.f32 %v4074_v18, %v4074_v18  ;;  %v2148_v27 = vadd.f32 %v2147_v0, %v4074_v18  ;;  %v2296_v54 = vld [vmem:[#allocation5 + $0x8] sm:$0xff]  ;;  %v2297_v61 = vld [vmem:[#allocation5 + $0x10] sm:$0xff] }
 0x4f5   :  { %v2540_v20 = vpop.f32.mrf.mxu1  ;;  %v2300_v0 = vld [vmem:[#allocation5 + $0x28] sm:$0xff] }
 0x4f6   :  { %2837 = vrsqrt.f32 %v2227_v9  ;;  %v4083_v45 = vadd.f32 %v2539_v49, %v4008_v22  ;;  %v2192_v37 = vadd.f32 %v2191_v25, %v2172_v3  ;;  %v2298_v49 = vld [vmem:[#allocation5 + $0x18] sm:$0xff]  ;;  %v2301_v3 = vld [vmem:[#allocation5 + $0x30] sm:$0xff] }
 0x4f7   :  { %v2541_v55 = vpop.f32.mrf.mxu1 }
 0x4f8   :  { %v2542_v47 = vadd.f32 %v2541_v55, %v2540_v20  ;;  %v2173_v31 = vmul.f32 %v4083_v45, %v4083_v45  ;;  %v2149_v34 = vadd.f32 %v2148_v27, %v4083_v45  ;;  %v2299_v20 = vld [vmem:[#allocation5 + $0x20] sm:$0xff]  ;;  %v2846_v27 = vld [vmem:[#allocation2 + $0x28] sm:$0xff] }
 0x4f9   :  { %v2543_v21 = vpop.f32.mrf.mxu1 }
 0x4fa   :  { %v4089_v17 = vadd.f32 %v2542_v47, %v4008_v22  ;;  %v2193_v51 = vadd.f32 %v2192_v37, %v2173_v31  ;;  %v2842_v47 = vld [vmem:[#allocation2 + $0x8] sm:$0xff] }
 0x4fb   :  { %v2544_v62 = vpop.f32.mrf.mxu1 }
 0x4fc   :  { %v2545_v46 = vadd.f32 %v2544_v62, %v2543_v21  ;;  %v2174_v10 = vmul.f32 %v4089_v17, %v4089_v17  ;;  %v2150_v53 = vadd.f32 %v2149_v34, %v4089_v17  ;;  %v2844_v21 = vld [vmem:[#allocation2 + $0x18] sm:$0xff] }
 0x4fd   :  { %v2546_v42 = vpop.f32.mrf.mxu1  ;;  %v2302_v62 = vld [vmem:[#allocation5 + $0x38] sm:$0xff] }
 0x4fe   :  { %v4098_v7 = vadd.f32 %v2545_v46, %v4008_v22  ;;  %v4117_v59 = vadd.f32 %v2193_v51, %v2174_v10  ;;  %v2845_v46 = vld [vmem:[#allocation2 + $0x20] sm:$0xff]  ;;  %v2848_v34 = vld [vmem:[#allocation2 + $0x38] sm:$0xff] }
 0x4ff   :  { %v2547_v13 = vpop.f32.mrf.mxu1 }
 0x500   :  { %v2548_v6 = vadd.f32 %v2547_v13, %v2546_v42  ;;  %v4120_v57 = vadd.f32 %v2150_v53, %v4098_v7  ;;  %v2175_v39 = vmul.f32 %v4098_v7, %v4098_v7  ;;  %v2847_v42 = vld [vmem:[#allocation2 + $0x30] sm:$0xff] }
 0x502   :  { %v4125_v44 = vadd.f32 %v2548_v6, %v4008_v22 }
 0x503   :  { %v2838_v26 = vpop.eup %2837 }
 0x504   :  { %v2231_v60 = vmul.f32 %v2838_v26, %v2211_v56  ;;  %v2232_v43 = vmul.f32 %v2838_v26, %v2212_v2  ;;  %v2233_v48 = vmul.f32 %v2838_v26, %v2213_v33  ;;  %v2234_v41 = vmul.f32 %v2838_v26, %v2214_v52 }
 0x505   :  { %v2235_v14 = vmul.f32 %v2838_v26, %v2215_v29  ;;  %v2236_v32 = vmul.f32 %v2838_v26, %v2216_v63  ;;  %v2237_v38 = vmul.f32 %v2838_v26, %v2217_v8  ;;  %v2238_v5 = vmul.f32 %v2838_v26, %v2218_v16 }
 0x506   :  { %v2247_v40 = vmax.f32 %v2231_v60, 0.0  ;;  %v2248_v19 = vmax.f32 %v2232_v43, 0.0  ;;  %v2249_v4 = vmax.f32 %v2233_v48, 0.0  ;;  %v2250_v12 = vmax.f32 %v2234_v41, 0.0 }
 0x507   :  { %v2251_v50 = vmax.f32 %v2235_v14, 0.0  ;;  %v2252_v35 = vmax.f32 %v2236_v32, 0.0  ;;  %v2253_v9 = vmax.f32 %v2237_v38, 0.0  ;;  %v2254_v22 = vmax.f32 %v2238_v5, 0.0 }
 0x508   :  { %v2263_v55 = vadd.f32 %v2841_v23, %v2247_v40  ;;  %v2264_v15 = vadd.f32 %v2842_v47, %v2248_v19  ;;  %v2265_v58 = vadd.f32 %v2843_v1, %v2249_v4  ;;  %v2266_v28 = vadd.f32 %v2844_v21, %v2250_v12 }
 0x509   :  { %v2267_v25 = vadd.f32 %v2845_v46, %v2251_v50  ;;  %v2268_v31 = vadd.f32 %v2846_v27, %v2252_v35  ;;  %v2269_v37 = vadd.f32 %v2847_v42, %v2253_v9  ;;  %v2270_v10 = vadd.f32 %v2848_v34, %v2254_v22  ;;  %v2305_v46 = vld [vmem:[#allocation5 + $0x50] sm:$0xff]  ;;  %v2306_v27 = vld [vmem:[#allocation5 + $0x58] sm:$0xff]  ;;  %v2849_v42 = vld [vmem:[#allocation2 + $0x40] sm:$0xff] }
 0x50a   :  { %2279 = vst [vmem:[#allocation14] sm:$0xff] %v2263_v55  ;;  %2280 = vst [vmem:[#allocation14 + $0x8] sm:$0xff] %v2264_v15  ;;  %v2311_v13 = vadd.f32 %v2295_v24, %v2247_v40  ;;  %v2312_v56 = vadd.f32 %v2296_v54, %v2248_v19  ;;  %v2313_v2 = vadd.f32 %v2297_v61, %v2249_v4  ;;  %v2850_v34 = vld [vmem:[#allocation2 + $0x48] sm:$0xff] }
 0x50b   :  { %2281 = vst [vmem:[#allocation14 + $0x10] sm:$0xff] %v2265_v58  ;;  %2282 = vst [vmem:[#allocation14 + $0x18] sm:$0xff] %v2266_v28  ;;  %v2314_v6 = vadd.f32 %v2298_v49, %v2250_v12  ;;  %v2315_v33 = vadd.f32 %v2299_v20, %v2251_v50  ;;  %v2316_v52 = vadd.f32 %v2300_v0, %v2252_v35  ;;  %v2304_v0 = vld [vmem:[#allocation5 + $0x48] sm:$0xff] }
 0x50c   :  { %2283 = vst [vmem:[#allocation14 + $0x20] sm:$0xff] %v2267_v25  ;;  %2284 = vst [vmem:[#allocation14 + $0x28] sm:$0xff] %v2268_v31  ;;  %v2317_v51 = vadd.f32 %v2301_v3, %v2253_v9  ;;  %v2318_v53 = vadd.f32 %v2302_v62, %v2254_v22  ;;  %v2195_v29 = vadd.f32 %v4117_v59, %v2175_v39  ;;  %v2307_v31 = vld [vmem:[#allocation5 + $0x60] sm:$0xff] }
 0x50d   :  { %2285 = vst [vmem:[#allocation14 + $0x30] sm:$0xff] %v2269_v37  ;;  %2286 = vst [vmem:[#allocation14 + $0x38] sm:$0xff] %v2270_v10  ;;  %v2152_v63 = vadd.f32 %v4120_v57, %v4125_v44  ;;  %v2176_v8 = vmul.f32 %v4125_v44, %v4125_v44 }
 0x50e   :  { %2327 = vst [vmem:[#allocation15] sm:$0xff] %v2311_v13  ;;  %2328 = vst [vmem:[#allocation15 + $0x8] sm:$0xff] %v2312_v56  ;;  %v2851_v13 = vld [vmem:[#allocation2 + $0x50] sm:$0xff] }
 0x50f   :  { %2329 = vst [vmem:[#allocation15 + $0x10] sm:$0xff] %v2313_v2  ;;  %2330 = vst [vmem:[#allocation15 + $0x18] sm:$0xff] %v2314_v6  ;;  %v2153_v16 = vrot.slane %v2152_v63, 4  ;;  %v2196_v26 = vadd.f32 %v2195_v29, %v2176_v8  ;;  %v2852_v2 = vld [vmem:[#allocation2 + $0x58] sm:$0xff] }
 0x510   :  { %2331 = vst [vmem:[#allocation15 + $0x20] sm:$0xff] %v2315_v33  ;;  %2332 = vst [vmem:[#allocation15 + $0x28] sm:$0xff] %v2316_v52  ;;  %v2308_v33 = vld [vmem:[#allocation5 + $0x68] sm:$0xff]  ;;  %v2309_v52 = vld [vmem:[#allocation5 + $0x70] sm:$0xff] }
 0x511   :  { %2333 = vst [vmem:[#allocation15 + $0x30] sm:$0xff] %v2317_v51  ;;  %2334 = vst [vmem:[#allocation15 + $0x38] sm:$0xff] %v2318_v53  ;;  %v2154_v60 = vadd.f32 %v2153_v16, %v2152_v63  ;;  %v2197_v43 = vrot.slane %v2196_v26, 4  ;;  %v2310_v51 = vld [vmem:[#allocation5 + $0x78] sm:$0xff]  ;;  %v2853_v53 = vld [vmem:[#allocation2 + $0x60] sm:$0xff] }
 0x512   :  { %v2854_v63 = vld [vmem:[#allocation2 + $0x68] sm:$0xff]  ;;  %v2855_v16 = vld [vmem:[#allocation2 + $0x70] sm:$0xff] }
 0x513   :  { %v2155_v48 = vrot.slane %v2154_v60, 2  ;;  %v2198_v41 = vadd.f32 %v2197_v43, %v2196_v26 }
 0x515   :  { %v2156_v14 = vadd.f32 %v2155_v48, %v2154_v60  ;;  %v2199_v32 = vrot.slane %v2198_v41, 2  ;;  %v2856_v60 = vld [vmem:[#allocation2 + $0x78] sm:$0xff] }
 0x517   :  { %v2157_v38 = vrot.slane %v2156_v14, 1  ;;  %v2200_v59 = vadd.f32 %v2199_v32, %v2198_v41 }
 0x519   :  { %v2158_v39 = vadd.f32 %v2157_v38, %v2156_v14  ;;  %v2201_v5 = vrot.slane %v2200_v59, 1 }
 0x51b   :  { %v2160_v57 = vmul.f32 0.015625, %v2158_v39  ;;  %v2202_v24 = vadd.f32 %v2201_v5, %v2200_v59 }
 0x51d   :  { %v2204_v40 = vmul.f32 0.015625, %v2202_v24  ;;  %v2206_v19 = vmul.f32 %v2160_v57, %v2160_v57  ;;  %v2219_v61 = vsub.f32 %v4066_v30, %v2160_v57  ;;  %v2220_v50 = vsub.f32 %v4063_v11, %v2160_v57 }
 0x51e   :  { %v2221_v35 = vsub.f32 %v4069_v36, %v2160_v57  ;;  %v2222_v9 = vsub.f32 %v4074_v18, %v2160_v57  ;;  %v2223_v49 = vsub.f32 %v4083_v45, %v2160_v57  ;;  %v2224_v20 = vsub.f32 %v4089_v17, %v2160_v57  ;;  %v2303_v36 = vld [vmem:[#allocation5 + $0x40] sm:$0xff] }
 0x51f   :  { %v2208_v4 = vsub.f32 %v2204_v40, %v2206_v19  ;;  %v2225_v23 = vsub.f32 %v4098_v7, %v2160_v57  ;;  %v2226_v55 = vsub.f32 %v4125_v44, %v2160_v57 }
 0x521   :  { %v2210_v12 = vmax.f32 %v2208_v4, 0.0 }
 0x523   :  { %v2228_v54 = vadd.f32 1e-05, %v2210_v12 }
 0x525   :  { %2839 = vrsqrt.f32 %v2228_v54 }
 0x532   :  { %v2840_v22 = vpop.eup %2839 }
 0x533   :  { %v2239_v47 = vmul.f32 %v2840_v22, %v2219_v61  ;;  %v2240_v15 = vmul.f32 %v2840_v22, %v2220_v50  ;;  %v2241_v1 = vmul.f32 %v2840_v22, %v2221_v35  ;;  %v2242_v58 = vmul.f32 %v2840_v22, %v2222_v9 }
 0x534   :  { %v2243_v30 = vmul.f32 %v2840_v22, %v2223_v49  ;;  %v2244_v21 = vmul.f32 %v2840_v22, %v2224_v20  ;;  %v2245_v11 = vmul.f32 %v2840_v22, %v2225_v23  ;;  %v2246_v28 = vmul.f32 %v2840_v22, %v2226_v55 }
 0x535   :  { %v2255_v18 = vmax.f32 %v2239_v47, 0.0  ;;  %v2256_v3 = vmax.f32 %v2240_v15, 0.0  ;;  %v2257_v62 = vmax.f32 %v2241_v1, 0.0  ;;  %v2258_v45 = vmax.f32 %v2242_v58, 0.0 }
 0x536   :  { %v2259_v17 = vmax.f32 %v2243_v30, 0.0  ;;  %v2260_v7 = vmax.f32 %v2244_v21, 0.0  ;;  %v2261_v44 = vmax.f32 %v2245_v11, 0.0  ;;  %v2262_v25 = vmax.f32 %v2246_v28, 0.0 }
 0x537   :  { %v2271_v37 = vadd.f32 %v2849_v42, %v2255_v18  ;;  %v2272_v10 = vadd.f32 %v2850_v34, %v2256_v3  ;;  %v2273_v56 = vadd.f32 %v2851_v13, %v2257_v62  ;;  %v2274_v6 = vadd.f32 %v2852_v2, %v2258_v45 }
 0x538   :  { %v2275_v29 = vadd.f32 %v2853_v53, %v2259_v17  ;;  %v2276_v8 = vadd.f32 %v2854_v63, %v2260_v7  ;;  %v2277_v26 = vadd.f32 %v2855_v16, %v2261_v44  ;;  %v2278_v43 = vadd.f32 %v2856_v60, %v2262_v25 }
 0x539   :  { %2287 = vst [vmem:[#allocation14 + $0x40] sm:$0xff] %v2271_v37  ;;  %2288 = vst [vmem:[#allocation14 + $0x48] sm:$0xff] %v2272_v10  ;;  %v2319_v48 = vadd.f32 %v2303_v36, %v2255_v18  ;;  %v2320_v41 = vadd.f32 %v2304_v0, %v2256_v3  ;;  %v2321_v14 = vadd.f32 %v2305_v46, %v2257_v62 }
 0x53a   :  { %2289 = vst [vmem:[#allocation14 + $0x50] sm:$0xff] %v2273_v56  ;;  %2290 = vst [vmem:[#allocation14 + $0x58] sm:$0xff] %v2274_v6  ;;  %v2322_v32 = vadd.f32 %v2306_v27, %v2258_v45  ;;  %v2323_v38 = vadd.f32 %v2307_v31, %v2259_v17  ;;  %v2324_v59 = vadd.f32 %v2308_v33, %v2260_v7 }
 0x53b   :  { %2291 = vst [vmem:[#allocation14 + $0x60] sm:$0xff] %v2275_v29  ;;  %2292 = vst [vmem:[#allocation14 + $0x68] sm:$0xff] %v2276_v8  ;;  %v2325_v39 = vadd.f32 %v2309_v52, %v2261_v44  ;;  %v2326_v5 = vadd.f32 %v2310_v51, %v2262_v25 }
 0x53c   :  { %2293 = vst [vmem:[#allocation14 + $0x70] sm:$0xff] %v2277_v26  ;;  %2294 = vst [vmem:[#allocation14 + $0x78] sm:$0xff] %v2278_v43 }
 0x53d   :  { %2335 = vst [vmem:[#allocation15 + $0x40] sm:$0xff] %v2319_v48  ;;  %2336 = vst [vmem:[#allocation15 + $0x48] sm:$0xff] %v2320_v41 }
 0x53e   :  { %2337 = vst [vmem:[#allocation15 + $0x50] sm:$0xff] %v2321_v14  ;;  %2338 = vst [vmem:[#allocation15 + $0x58] sm:$0xff] %v2322_v32 }
 0x53f   :  { %3008 = shalt.err (!%p3005_p11)
}
 0x540   :  { %2354 = dma.vmem_to_hbm [thread:$0]  %s4140_s24, 2048, %s4170_s11, [#allocation4], %s3051_s26, %s3051_s26, %s3052_s27   ;;  %2339 = vst [vmem:[#allocation15 + $0x60] sm:$0xff] %v2323_v38  ;;  %2340 = vst [vmem:[#allocation15 + $0x68] sm:$0xff] %v2324_v59 }
 0x541   :  { %2341 = vst [vmem:[#allocation15 + $0x70] sm:$0xff] %v2325_v39  ;;  %2342 = vst [vmem:[#allocation15 + $0x78] sm:$0xff] %v2326_v5  ;;  %s3017_s15 = scalar_lea.vmem %s2361_s28, 2048  ;;  %p3022_p13 = scmp.lt.s32.totalorder %s2361_s28, %s2361_s28 }
 0x542   :  { %p3018_p12 = scmp.ne.s32.totalorder %s2361_s28, %s3017_s15  ;;  %p3023_p0 = scmp.lt.s32.totalorder %s3017_s15, %s3017_s15 }
 0x544   :  { %p3024_p1 = por %p3023_p0, %p3022_p13 }
 0x546   :  { %p3025_p2 = pnand %p3024_p1, %p3018_p12 }
 0x548   :  { %3028 = shalt.err (!%p3025_p2)
}
 0x549   :  { %2366 = dma.vmem_to_hbm [thread:$0]  %s2361_s28, 2048, %s4171_s12, [#allocation16], %s3051_s26, %s3051_s26, %s3052_s27  }
 0x54a   :  { %3045 = dma.done.wait [#allocation4], 2048  }
 0x54b   :  { %3046 = vsyncadd [#allocation4], 4294965248 }
 0x54c   :  { %3047 = dma.done.wait [#allocation16], 2048  }
 0x54d   :  { %3048 = vsyncadd [#allocation16], 4294965248 }
 0x54e   :  { %2373 = vsyncpa [#allocation3], 1 }
 0x54f   :  { %2374 = vsyncpa [#allocation6], 1 }
 0x550   :  { %2375 = vsyncpa [#allocation9], 1 }
 0x551   :  { %2376 = vsyncpa [#allocation12], 1 }
 0x552   :  { %2377 = vsyncpa [#allocation4], 1 }
 0x553   :  { %2378 = vsyncpa [#allocation16], 1 }

</bundles_post_ra>
